<compile_context>
chip_gen: v7x
topology: tpu7x:2x2x1
jax: 0.10.0
libtpu: 0.0.40
codegen_flags: <defaults>
</compile_context>

<pallas_src>
import functools

import jax
import jax.numpy as jnp
from jax import lax
from jax.experimental import pallas as pl
from jax.experimental.pallas import tpu as pltpu


def _sha_kernel(*refs, bb, tgt_len, src_len, proj_dim, kv_fused, need_weights,
                compute_dtype):
    """One grid step: `bb` batch elements, full attention for each."""
    if kv_fused:
        (q_ref, kv_ref, wq_ref, bq_ref, wkv_ref, bkv_ref, wo_ref, bo_ref) = refs[:8]
        out_refs = refs[8:]
    else:
        (q_ref, k_ref, v_ref, wq_ref, bq_ref, wk_ref, bk_ref, wv_ref, bv_ref,
         wo_ref, bo_ref) = refs[:11]
        out_refs = refs[11:]
    out_ref = out_refs[0]
    attw_ref = out_refs[1] if need_weights else None

    q_dim = q_ref.shape[-1]
    out_dim = wo_ref.shape[-1]

    def cast(x):
        return x if x.dtype == compute_dtype else x.astype(compute_dtype)

    # ---- fused Q (and K|V) projections over merged (bb*seq, D) rows ----------
    # nn.Linear: y = x @ W^T + b.  W^T is pre-transposed and the 1/sqrt(P)
    # scaling is already folded into Wq/bq by the wrapper (no in-kernel mul).
    # NOTE: these reshapes only merge/split the leading (batch) dim; with
    # tgt_len/src_len multiples of 8 they are layout-preserving.
    # TODO(synk): pad tgt_len/src_len to multiples of 8 in the wrapper when
    # they are not, to avoid hidden VMEM relayout copies here.
    q2 = jnp.dot(cast(q_ref[...].reshape(bb * tgt_len, q_dim)), cast(wq_ref[...]),
                 preferred_element_type=jnp.float32) + bq_ref[...]

    if kv_fused:
        kv_dim = kv_ref.shape[-1]
        kv2 = jnp.dot(cast(kv_ref[...].reshape(bb * src_len, kv_dim)),
                      cast(wkv_ref[...]),
                      preferred_element_type=jnp.float32) + bkv_ref[...]
        k2 = kv2[:, :proj_dim]
        v2 = kv2[:, proj_dim:]
    else:
        k_dim = k_ref.shape[-1]
        v_dim = v_ref.shape[-1]
        k2 = jnp.dot(cast(k_ref[...].reshape(bb * src_len, k_dim)), cast(wk_ref[...]),
                     preferred_element_type=jnp.float32) + bk_ref[...]
        v2 = jnp.dot(cast(v_ref[...].reshape(bb * src_len, v_dim)), cast(wv_ref[...]),
                     preferred_element_type=jnp.float32) + bv_ref[...]

    q3 = q2.reshape(bb, tgt_len, proj_dim)
    k3 = k2.reshape(bb, src_len, proj_dim)
    v3 = v2.reshape(bb, src_len, proj_dim)

    # ---- batched scaled dot-product attention (no per-batch Python unroll) ---
    # Contract the last dims of q and k (batched): k^T is never materialized.
    scores = jnp.einsum("btp,bsp->bts", cast(q3), cast(k3),
                        preferred_element_type=jnp.float32)       # (bb, T, S)

    # numerically stable softmax (matches fairseq utils.softmax)
    m = jnp.max(scores, axis=-1, keepdims=True)
    e = jnp.exp(scores - m)
    denom = jnp.sum(e, axis=-1, keepdims=True)
    # EUP approximate reciprocal + one Newton-Raphson refinement (~f32 exact);
    # keeps the long VPU divide sequence out of the softmax epilogue.
    r = pl.reciprocal(denom, approx=True)
    r = r * (2.0 - denom * r)
    probs = e * r

    if need_weights:
        # Matches torch's `attn_weights_float.type_as(attn_weights)` cast.
        attw_ref[...] = probs.astype(attw_ref.dtype)

    ctx = jnp.einsum("bts,bsp->btp", cast(probs), cast(v3),
                     preferred_element_type=jnp.float32)          # (bb, T, P)

    # ---- fused output projection over merged rows -----------------------------
    out = jnp.dot(cast(ctx.reshape(bb * tgt_len, proj_dim)), cast(wo_ref[...]),
                  preferred_element_type=jnp.float32) + bo_ref[...]
    # TODO(synk): out_dim / src_len below 128 lanes make these masked partial
    # stores; a lane-dense merged (bb, T*D) out layout would speed up the
    # store path for store-bound shapes.
    out_ref[...] = out.reshape(bb, tgt_len, out_dim).astype(out_ref.dtype)


def _tpu_vmem_capacity_bytes():
    try:
        return int(pltpu.get_tpu_info().vmem_capacity_bytes)
    except Exception:
        return 64 * 1024 * 1024  # conservative fallback (v7x per-TC size)


def _num_tensorcores_per_chip():
    try:
        kind = jax.devices()[0].device_kind.lower()
    except Exception:
        return 1
    return 2 if ("v7" in kind or "7x" in kind) else 1


def _pick_batch_block(bsz, per_batch_bytes, budget_bytes, num_cores):
    """Largest batch block whose rough VMEM footprint fits the budget.  Only on
    2-TensorCore chips do we prefer blocks that leave >= 2 grid steps (so both
    cores get work); on 1-TC chips the grid is a serial loop and the largest
    fitting block wins (fewest per-step overheads, fattest MXU M)."""
    divisors = [d for d in range(1, bsz + 1) if bsz % d == 0]
    fitting = [d for d in divisors if d * per_batch_bytes <= budget_bytes] or [1]
    if num_cores >= 2:
        two_plus = [d for d in fitting if bsz // d >= num_cores]
        if two_plus:
            return two_plus[-1]
    return fitting[-1]


def single_head_attention(query, key, value, params, proj_dim, *,
                          need_weights=True, compute_dtype=jnp.float32):
    """query: (tgt_len, bsz, q_dim); key/value: (src_len, bsz, k_dim/v_dim).

    Returns (attn, attn_weights) matching the PyTorch module's forward:
      attn         : (tgt_len, bsz, out_dim)
      attn_weights : (tgt_len, bsz, src_len) if need_weights else None
    """
    tgt_len, bsz, q_dim = query.shape
    src_len, _, k_dim = key.shape
    _, _, v_dim = value.shape
    out_dim = params["wo"].shape[0]
    scaling = float(proj_dim) ** (-0.5)

    # Fuse the K and V projections into one matmul when they consume the same
    # tensor (self / encoder-decoder attention): doubles MXU lane fill.
    kv_fused = (key is value) and (k_dim == v_dim)

    # Batch-first inputs for the kernel.
    # TODO(synk): these wrapper transposes are extra HBM round trips; a
    # batch-first end-to-end model layout would remove them.
    q_b = jnp.transpose(query, (1, 0, 2))   # (B, T, Dq)
    k_b = jnp.transpose(key, (1, 0, 2))     # (B, S, Dk)
    v_b = None if kv_fused else jnp.transpose(value, (1, 0, 2))

    # Pre-transpose weights once; fold the 1/sqrt(P) scaling into Wq/bq
    # (torch applies it after the bias, so both pick up the factor).
    wq_t = jnp.transpose(params["wq"]) * scaling        # (q_dim, P)
    bq = (params["bq"] * scaling).reshape(1, -1)
    wo_t = jnp.transpose(params["wo"])                  # (P, out_dim)
    bo = params["bo"].reshape(1, -1)
    if kv_fused:
        wkv_t = jnp.concatenate(
            [jnp.transpose(params["wk"]), jnp.transpose(params["wv"])], axis=1)
        bkv = jnp.concatenate([params["bk"], params["bv"]]).reshape(1, -1)
    else:
        wk_t = jnp.transpose(params["wk"])
        bk = params["bk"].reshape(1, -1)
        wv_t = jnp.transpose(params["wv"])
        bv = params["bv"].reshape(1, -1)

    if compute_dtype != jnp.float32:
        # bf16 fast path: cast weights once here (activations cast in-kernel);
        # accumulation stays f32 via preferred_element_type.
        wq_t = wq_t.astype(compute_dtype)
        wo_t = wo_t.astype(compute_dtype)
        if kv_fused:
            wkv_t = wkv_t.astype(compute_dtype)
        else:
            wk_t = wk_t.astype(compute_dtype)
            wv_t = wv_t.astype(compute_dtype)

    # ---- generation-aware VMEM budget & batch-block selection -----------------
    itemsize = 4
    per_batch_bytes = itemsize * (
        2 * (tgt_len * q_dim + src_len * (k_dim + v_dim))            # inputs (x2 buf)
        + 2 * tgt_len * (out_dim + (src_len if need_weights else 0))  # outputs (x2 buf)
        + tgt_len * (2 * proj_dim + out_dim)                          # q rows, ctx, out
        + 2 * src_len * proj_dim                                      # k/v rows
        + 2 * tgt_len * src_len)                                      # scores / probs
    weight_bytes = 2 * itemsize * (
        (q_dim + k_dim + v_dim + out_dim) * proj_dim + 3 * proj_dim + out_dim)
    vmem_cap = _tpu_vmem_capacity_bytes()
    budget = max(vmem_cap // 2 - weight_bytes, 1)
    vmem_limit = int((vmem_cap * 3) // 4)
    num_cores = _num_tensorcores_per_chip()
    bb = _pick_batch_block(bsz, per_batch_bytes, budget, num_cores)
    grid = (bsz // bb,)

    attw_dtype = query.dtype   # torch: attn_weights_float.type_as(attn_weights)

    def build_and_run(single_buffer_weights):
        def const_spec(arr):
            ndim = arr.ndim
            idx = lambda i, _n=ndim: (0,) * _n
            if single_buffer_weights:
                # Grid-constant operands: double-buffering buys nothing.
                return pl.BlockSpec(arr.shape, idx, pipeline_mode=pl.Buffered(1))
            return pl.BlockSpec(arr.shape, idx)

        in_specs = [pl.BlockSpec((bb, tgt_len, q_dim), lambda i: (i, 0, 0)),
                    pl.BlockSpec((bb, src_len, k_dim), lambda i: (i, 0, 0))]
        operands = [q_b, k_b]
        if not kv_fused:
            in_specs.append(pl.BlockSpec((bb, src_len, v_dim), lambda i: (i, 0, 0)))
            operands.append(v_b)
        weights = ([wq_t, bq, wkv_t, bkv, wo_t, bo] if kv_fused
                   else [wq_t, bq, wk_t, bk, wv_t, bv, wo_t, bo])
        in_specs += [const_spec(w) for w in weights]
        operands += weights

        out_shapes = [jax.ShapeDtypeStruct((bsz, tgt_len, out_dim), query.dtype)]
        out_specs = [pl.BlockSpec((bb, tgt_len, out_dim), lambda i: (i, 0, 0))]
        if need_weights:
            out_shapes.append(
                jax.ShapeDtypeStruct((bsz, tgt_len, src_len), attw_dtype))
            out_specs.append(
                pl.BlockSpec((bb, tgt_len, src_len), lambda i: (i, 0, 0)))

        kern = functools.partial(
            _sha_kernel, bb=bb, tgt_len=tgt_len, src_len=src_len,
            proj_dim=proj_dim, kv_fused=kv_fused, need_weights=need_weights,
            compute_dtype=compute_dtype)

        return pl.pallas_call(
            kern,
            out_shape=tuple(out_shapes),
            grid_spec=pltpu.PrefetchScalarGridSpec(
                num_scalar_prefetch=0, grid=grid,
                in_specs=in_specs, out_specs=out_specs),
            compiler_params=pltpu.CompilerParams(
                dimension_semantics=("parallel",),
                vmem_limit_bytes=vmem_limit),
        )(*operands)

    try:
        results = build_and_run(single_buffer_weights=True)
    except Exception:
        # pipeline_mode=pl.Buffered(1) not supported on this jax version:
        # retry with default double-buffered weight specs.
        results = build_and_run(single_buffer_weights=False)

    attn = jnp.transpose(results[0], (1, 0, 2))              # (T, B, out_dim)
    if need_weights:
        attn_weights = jnp.transpose(results[1], (1, 0, 2))  # (T, B, S)
        return attn, attn_weights
    return attn, None


def _reference(query, key, value, params, proj_dim):
    scaling = float(proj_dim) ** (-0.5)
    q = jnp.einsum("tbd,pd->tbp", query, params["wq"]) + params["bq"]
    k = jnp.einsum("sbd,pd->sbp", key, params["wk"]) + params["bk"]
    v = jnp.einsum("sbd,pd->sbp", value, params["wv"]) + params["bv"]
    q = q * scaling
    qb = jnp.transpose(q, (1, 0, 2))
    kb = jnp.transpose(k, (1, 0, 2))
    vb = jnp.transpose(v, (1, 0, 2))
    scores = jnp.einsum("btp,bsp->bts", qb, kb)
    probs = jax.nn.softmax(scores, axis=-1)
    attn = jnp.einsum("bts,bsp->btp", probs, vb)
    attn = jnp.transpose(attn, (1, 0, 2))
    attn = jnp.einsum("tbp,op->tbo", attn, params["wo"]) + params["bo"]
    return attn, jnp.transpose(probs, (1, 0, 2))


if __name__ == "__main__":
    # Small shapes consistent with the module's Time x Batch x Channel forward.
    tgt_len, src_len, bsz = 8, 8, 4
    q_in_dim = k_in_dim = v_in_dim = 32
    proj_dim = 32
    out_dim = 32

    key0 = jax.random.PRNGKey(0)
    keys = jax.random.split(key0, 12)

    # Deterministic parameter init (nn.Linear shapes: W (out, in), b (out,))
    params = {
        "wq": 0.05 * jax.random.normal(keys[0], (proj_dim, q_in_dim), jnp.float32),
        "bq": 0.01 * jax.random.normal(keys[1], (proj_dim,), jnp.float32),
        "wk": 0.05 * jax.random.normal(keys[2], (proj_dim, k_in_dim), jnp.float32),
        "bk": 0.01 * jax.random.normal(keys[3], (proj_dim,), jnp.float32),
        "wv": 0.05 * jax.random.normal(keys[4], (proj_dim, v_in_dim), jnp.float32),
        "bv": 0.01 * jax.random.normal(keys[5], (proj_dim,), jnp.float32),
        "wo": 0.05 * jax.random.normal(keys[6], (out_dim, proj_dim), jnp.float32),
        "bo": 0.01 * jax.random.normal(keys[7], (out_dim,), jnp.float32),
    }

    # Inputs in Time x Batch x Channel layout (as the torch module expects).
    query = jax.random.normal(keys[8], (tgt_len, bsz, q_in_dim), jnp.float32)
    key_t = jax.random.normal(keys[9], (src_len, bsz, k_in_dim), jnp.float32)
    value = jax.random.normal(keys[10], (src_len, bsz, v_in_dim), jnp.float32)

    # 1) default path: separate K/V, attention weights requested (module default)
    attn, attn_weights = single_head_attention(query, key_t, value, params, proj_dim)
    attn = jax.block_until_ready(attn)
    attn_weights = jax.block_until_ready(attn_weights)
    ref_attn, ref_w = _reference(query, key_t, value, params, proj_dim)
    assert attn.shape == (tgt_len, bsz, out_dim)
    assert attn_weights.shape == (tgt_len, bsz, src_len)
    assert jnp.allclose(attn, ref_attn, atol=1e-4, rtol=1e-4)
    assert jnp.allclose(attn_weights, ref_w, atol=1e-4, rtol=1e-4)

    # 2) need_weights=False path (the (B,T,S) probs writeback is skipped)
    attn_nw, attw_none = single_head_attention(query, key_t, value, params,
                                               proj_dim, need_weights=False)
    attn_nw = jax.block_until_ready(attn_nw)
    assert attw_none is None
    assert jnp.allclose(attn_nw, ref_attn, atol=1e-4, rtol=1e-4)

    # 3) fused-KV path (key is value, as in encoder-decoder attention)
    attn_kv, w_kv = single_head_attention(query, key_t, key_t, params, proj_dim)
    attn_kv = jax.block_until_ready(attn_kv)
    w_kv = jax.block_until_ready(w_kv)
    ref_attn_kv, ref_w_kv = _reference(query, key_t, key_t, params, proj_dim)
    assert jnp.allclose(attn_kv, ref_attn_kv, atol=1e-4, rtol=1e-4)
    assert jnp.allclose(w_kv, ref_w_kv, atol=1e-4, rtol=1e-4)

    print("KERNEL_OK")
</pallas_src>

<mosaic_0001>
module attributes {stable_mosaic.version = 11 : i64} {
  func.func @_sha_kernel(%arg0: i32, %arg1: memref<4x8x32xf32, #tpu.memory_space<vmem>>, %arg2: memref<4x8x32xf32, #tpu.memory_space<vmem>>, %arg3: memref<4x8x32xf32, #tpu.memory_space<vmem>>, %arg4: memref<32x32xf32, #tpu.memory_space<vmem>>, %arg5: memref<1x32xf32, #tpu.memory_space<vmem>>, %arg6: memref<32x32xf32, #tpu.memory_space<vmem>>, %arg7: memref<1x32xf32, #tpu.memory_space<vmem>>, %arg8: memref<32x32xf32, #tpu.memory_space<vmem>>, %arg9: memref<1x32xf32, #tpu.memory_space<vmem>>, %arg10: memref<32x32xf32, #tpu.memory_space<vmem>>, %arg11: memref<1x32xf32, #tpu.memory_space<vmem>>, %arg12: memref<4x8x32xf32, #tpu.memory_space<vmem>>, %arg13: memref<4x8x8xf32, #tpu.memory_space<vmem>>) attributes {dimension_semantics = [#tpu.dimension_semantics<parallel>], iteration_bounds = array<i64: 1>, scalar_prefetch = 0 : i64, scratch_operands = 0 : i64, tpu.core_type = #tpu.core_type<tc>, window_params = [{transform_indices = @transform_0, window_bounds = array<i64: 4, 8, 32>}, {transform_indices = @transform_1, window_bounds = array<i64: 4, 8, 32>}, {transform_indices = @transform_2, window_bounds = array<i64: 4, 8, 32>}, {pipeline_mode = #tpu.pipeline_mode<synchronous>, transform_indices = @transform_3, window_bounds = array<i64: 32, 32>}, {pipeline_mode = #tpu.pipeline_mode<synchronous>, transform_indices = @transform_4, window_bounds = array<i64: 1, 32>}, {pipeline_mode = #tpu.pipeline_mode<synchronous>, transform_indices = @transform_5, window_bounds = array<i64: 32, 32>}, {pipeline_mode = #tpu.pipeline_mode<synchronous>, transform_indices = @transform_6, window_bounds = array<i64: 1, 32>}, {pipeline_mode = #tpu.pipeline_mode<synchronous>, transform_indices = @transform_7, window_bounds = array<i64: 32, 32>}, {pipeline_mode = #tpu.pipeline_mode<synchronous>, transform_indices = @transform_8, window_bounds = array<i64: 1, 32>}, {pipeline_mode = #tpu.pipeline_mode<synchronous>, transform_indices = @transform_9, window_bounds = array<i64: 32, 32>}, {pipeline_mode = #tpu.pipeline_mode<synchronous>, transform_indices = @transform_10, window_bounds = array<i64: 1, 32>}, {transform_indices = @transform_11, window_bounds = array<i64: 4, 8, 32>}, {transform_indices = @transform_12, window_bounds = array<i64: 4, 8, 8>}]} {
    %c0 = arith.constant 0 : index
    %c0_0 = arith.constant 0 : index
    %c0_1 = arith.constant 0 : index
    %0 = vector.load %arg1[%c0, %c0_0, %c0_1] : memref<4x8x32xf32, #tpu.memory_space<vmem>>, vector<4x8x32xf32>
    %1 = vector.shape_cast %0 : vector<4x8x32xf32> to vector<32x32xf32>
    %c0_2 = arith.constant 0 : index
    %c0_3 = arith.constant 0 : index
    %2 = vector.load %arg4[%c0_2, %c0_3] : memref<32x32xf32, #tpu.memory_space<vmem>>, vector<32x32xf32>
    %cst = arith.constant dense<0.000000e+00> : vector<32x32xf32>
    %3 = tpu.matmul %1, %2, %cst {dimension_numbers = #tpu.dot_dimension_numbers<[1], [0], [0], [1], [0, 0, 1, 1], [], []>} : vector<32x32xf32>, vector<32x32xf32>, vector<32x32xf32> -> vector<32x32xf32>
    %c0_4 = arith.constant 0 : index
    %c0_5 = arith.constant 0 : index
    %4 = vector.load %arg5[%c0_4, %c0_5] : memref<1x32xf32, #tpu.memory_space<vmem>>, vector<1x32xf32>
    %5 = vector.broadcast %4 : vector<1x32xf32> to vector<32x32xf32>
    %6 = arith.addf %3, %5 : vector<32x32xf32>
    %c0_6 = arith.constant 0 : index
    %c0_7 = arith.constant 0 : index
    %c0_8 = arith.constant 0 : index
    %7 = vector.load %arg2[%c0_6, %c0_7, %c0_8] : memref<4x8x32xf32, #tpu.memory_space<vmem>>, vector<4x8x32xf32>
    %8 = vector.shape_cast %7 : vector<4x8x32xf32> to vector<32x32xf32>
    %c0_9 = arith.constant 0 : index
    %c0_10 = arith.constant 0 : index
    %9 = vector.load %arg6[%c0_9, %c0_10] : memref<32x32xf32, #tpu.memory_space<vmem>>, vector<32x32xf32>
    %cst_11 = arith.constant dense<0.000000e+00> : vector<32x32xf32>
    %10 = tpu.matmul %8, %9, %cst_11 {dimension_numbers = #tpu.dot_dimension_numbers<[1], [0], [0], [1], [0, 0, 1, 1], [], []>} : vector<32x32xf32>, vector<32x32xf32>, vector<32x32xf32> -> vector<32x32xf32>
    %c0_12 = arith.constant 0 : index
    %c0_13 = arith.constant 0 : index
    %11 = vector.load %arg7[%c0_12, %c0_13] : memref<1x32xf32, #tpu.memory_space<vmem>>, vector<1x32xf32>
    %12 = vector.broadcast %11 : vector<1x32xf32> to vector<32x32xf32>
    %13 = arith.addf %10, %12 : vector<32x32xf32>
    %c0_14 = arith.constant 0 : index
    %c0_15 = arith.constant 0 : index
    %c0_16 = arith.constant 0 : index
    %14 = vector.load %arg3[%c0_14, %c0_15, %c0_16] : memref<4x8x32xf32, #tpu.memory_space<vmem>>, vector<4x8x32xf32>
    %15 = vector.shape_cast %14 : vector<4x8x32xf32> to vector<32x32xf32>
    %c0_17 = arith.constant 0 : index
    %c0_18 = arith.constant 0 : index
    %16 = vector.load %arg8[%c0_17, %c0_18] : memref<32x32xf32, #tpu.memory_space<vmem>>, vector<32x32xf32>
    %cst_19 = arith.constant dense<0.000000e+00> : vector<32x32xf32>
    %17 = tpu.matmul %15, %16, %cst_19 {dimension_numbers = #tpu.dot_dimension_numbers<[1], [0], [0], [1], [0, 0, 1, 1], [], []>} : vector<32x32xf32>, vector<32x32xf32>, vector<32x32xf32> -> vector<32x32xf32>
    %c0_20 = arith.constant 0 : index
    %c0_21 = arith.constant 0 : index
    %18 = vector.load %arg9[%c0_20, %c0_21] : memref<1x32xf32, #tpu.memory_space<vmem>>, vector<1x32xf32>
    %19 = vector.broadcast %18 : vector<1x32xf32> to vector<32x32xf32>
    %20 = arith.addf %17, %19 : vector<32x32xf32>
    %21 = vector.shape_cast %6 : vector<32x32xf32> to vector<4x8x32xf32>
    %22 = vector.shape_cast %13 : vector<32x32xf32> to vector<4x8x32xf32>
    %23 = vector.shape_cast %20 : vector<32x32xf32> to vector<4x8x32xf32>
    "tpu.trace_start"() <{level = 10 : i32, message = "btp,bsp->bts"}> : () -> ()
    %cst_22 = arith.constant dense<0.000000e+00> : vector<4x8x8xf32>
    %24 = tpu.matmul %21, %22, %cst_22 {dimension_numbers = #tpu.dot_dimension_numbers<[2], [2], [1], [1], [0, 0, 0, 1, 1, 1], [0], [0]>} : vector<4x8x32xf32>, vector<4x8x32xf32>, vector<4x8x8xf32> -> vector<4x8x8xf32>
    "tpu.trace_stop"() : () -> ()
    %cst_23 = arith.constant dense<0xFF800000> : vector<4x8xf32>
    %25 = vector.multi_reduction <maximumf>, %24, %cst_23 [2] : vector<4x8x8xf32> to vector<4x8xf32>
    %26 = vector.shape_cast %25 : vector<4x8xf32> to vector<4x8x1xf32>
    %27 = vector.broadcast %26 : vector<4x8x1xf32> to vector<4x8x8xf32>
    %28 = arith.subf %24, %27 : vector<4x8x8xf32>
    %29 = math.exp %28 : vector<4x8x8xf32>
    %cst_24 = arith.constant dense<0.000000e+00> : vector<4x8xf32>
    %30 = vector.multi_reduction <add>, %29, %cst_24 [2] : vector<4x8x8xf32> to vector<4x8xf32>
    %31 = vector.shape_cast %30 : vector<4x8xf32> to vector<4x8x1xf32>
    %32 = tpu.reciprocal %31 {approx = true} : vector<4x8x1xf32> -> vector<4x8x1xf32>
    %33 = arith.mulf %31, %32 : vector<4x8x1xf32>
    %cst_25 = arith.constant 2.000000e+00 : f32
    %34 = vector.broadcast %cst_25 : f32 to vector<4x8x1xf32>
    %35 = arith.subf %34, %33 : vector<4x8x1xf32>
    %36 = arith.mulf %32, %35 : vector<4x8x1xf32>
    %37 = vector.broadcast %36 : vector<4x8x1xf32> to vector<4x8x8xf32>
    %38 = arith.mulf %29, %37 : vector<4x8x8xf32>
    %c0_26 = arith.constant 0 : index
    %c0_27 = arith.constant 0 : index
    %c0_28 = arith.constant 0 : index
    %39 = vector.load %arg13[%c0_26, %c0_27, %c0_28] : memref<4x8x8xf32, #tpu.memory_space<vmem>>, vector<4x8x8xf32>
    tpu.vector_store %arg13[%c0_26, %c0_27, %c0_28], %38 {strides = array<i32>} : memref<4x8x8xf32, #tpu.memory_space<vmem>>, vector<4x8x8xf32>,
    "tpu.trace_start"() <{level = 10 : i32, message = "bts,bsp->btp"}> : () -> ()
    %cst_29 = arith.constant dense<0.000000e+00> : vector<4x8x32xf32>
    %40 = tpu.matmul %38, %23, %cst_29 {dimension_numbers = #tpu.dot_dimension_numbers<[2], [1], [1], [2], [0, 0, 0, 1, 1, 2], [0], [0]>} : vector<4x8x8xf32>, vector<4x8x32xf32>, vector<4x8x32xf32> -> vector<4x8x32xf32>
    "tpu.trace_stop"() : () -> ()
    %41 = vector.shape_cast %40 : vector<4x8x32xf32> to vector<32x32xf32>
    %c0_30 = arith.constant 0 : index
    %c0_31 = arith.constant 0 : index
    %42 = vector.load %arg10[%c0_30, %c0_31] : memref<32x32xf32, #tpu.memory_space<vmem>>, vector<32x32xf32>
    %cst_32 = arith.constant dense<0.000000e+00> : vector<32x32xf32>
    %43 = tpu.matmul %41, %42, %cst_32 {dimension_numbers = #tpu.dot_dimension_numbers<[1], [0], [0], [1], [0, 0, 1, 1], [], []>} : vector<32x32xf32>, vector<32x32xf32>, vector<32x32xf32> -> vector<32x32xf32>
    %c0_33 = arith.constant 0 : index
    %c0_34 = arith.constant 0 : index
    %44 = vector.load %arg11[%c0_33, %c0_34] : memref<1x32xf32, #tpu.memory_space<vmem>>, vector<1x32xf32>
    %45 = vector.broadcast %44 : vector<1x32xf32> to vector<32x32xf32>
    %46 = arith.addf %43, %45 : vector<32x32xf32>
    %47 = vector.shape_cast %46 : vector<32x32xf32> to vector<4x8x32xf32>
    %c0_35 = arith.constant 0 : index
    %c0_36 = arith.constant 0 : index
    %c0_37 = arith.constant 0 : index
    %48 = vector.load %arg12[%c0_35, %c0_36, %c0_37] : memref<4x8x32xf32, #tpu.memory_space<vmem>>, vector<4x8x32xf32>
    tpu.vector_store %arg12[%c0_35, %c0_36, %c0_37], %47 {strides = array<i32>} : memref<4x8x32xf32, #tpu.memory_space<vmem>>, vector<4x8x32xf32>,
    return
  }
  func.func @transform_0(%arg0: i32) -> (i32, i32, i32) {
    %c0_i32 = arith.constant 0 : i32
    %c0_i32_0 = arith.constant 0 : i32
    %c0_i32_1 = arith.constant 0 : i32
    return %arg0, %c0_i32, %c0_i32_0 : i32, i32, i32
  }
  func.func @transform_1(%arg0: i32) -> (i32, i32, i32) {
    %c0_i32 = arith.constant 0 : i32
    %c0_i32_0 = arith.constant 0 : i32
    %c0_i32_1 = arith.constant 0 : i32
    return %arg0, %c0_i32, %c0_i32_0 : i32, i32, i32
  }
  func.func @transform_2(%arg0: i32) -> (i32, i32, i32) {
    %c0_i32 = arith.constant 0 : i32
    %c0_i32_0 = arith.constant 0 : i32
    %c0_i32_1 = arith.constant 0 : i32
    return %arg0, %c0_i32, %c0_i32_0 : i32, i32, i32
  }
  func.func @transform_3(%arg0: i32) -> (i32, i32) {
    %c0_i32 = arith.constant 0 : i32
    %c0_i32_0 = arith.constant 0 : i32
    %c0_i32_1 = arith.constant 0 : i32
    return %c0_i32, %c0_i32_0 : i32, i32
  }
  func.func @transform_4(%arg0: i32) -> (i32, i32) {
    %c0_i32 = arith.constant 0 : i32
    %c0_i32_0 = arith.constant 0 : i32
    %c0_i32_1 = arith.constant 0 : i32
    return %c0_i32, %c0_i32_0 : i32, i32
  }
  func.func @transform_5(%arg0: i32) -> (i32, i32) {
    %c0_i32 = arith.constant 0 : i32
    %c0_i32_0 = arith.constant 0 : i32
    %c0_i32_1 = arith.constant 0 : i32
    return %c0_i32, %c0_i32_0 : i32, i32
  }
  func.func @transform_6(%arg0: i32) -> (i32, i32) {
    %c0_i32 = arith.constant 0 : i32
    %c0_i32_0 = arith.constant 0 : i32
    %c0_i32_1 = arith.constant 0 : i32
    return %c0_i32, %c0_i32_0 : i32, i32
  }
  func.func @transform_7(%arg0: i32) -> (i32, i32) {
    %c0_i32 = arith.constant 0 : i32
    %c0_i32_0 = arith.constant 0 : i32
    %c0_i32_1 = arith.constant 0 : i32
    return %c0_i32, %c0_i32_0 : i32, i32
  }
  func.func @transform_8(%arg0: i32) -> (i32, i32) {
    %c0_i32 = arith.constant 0 : i32
    %c0_i32_0 = arith.constant 0 : i32
    %c0_i32_1 = arith.constant 0 : i32
    return %c0_i32, %c0_i32_0 : i32, i32
  }
  func.func @transform_9(%arg0: i32) -> (i32, i32) {
    %c0_i32 = arith.constant 0 : i32
    %c0_i32_0 = arith.constant 0 : i32
    %c0_i32_1 = arith.constant 0 : i32
    return %c0_i32, %c0_i32_0 : i32, i32
  }
  func.func @transform_10(%arg0: i32) -> (i32, i32) {
    %c0_i32 = arith.constant 0 : i32
    %c0_i32_0 = arith.constant 0 : i32
    %c0_i32_1 = arith.constant 0 : i32
    return %c0_i32, %c0_i32_0 : i32, i32
  }
  func.func @transform_11(%arg0: i32) -> (i32, i32, i32) {
    %c0_i32 = arith.constant 0 : i32
    %c0_i32_0 = arith.constant 0 : i32
    %c0_i32_1 = arith.constant 0 : i32
    return %arg0, %c0_i32, %c0_i32_0 : i32, i32, i32
  }
  func.func @transform_12(%arg0: i32) -> (i32, i32, i32) {
    %c0_i32 = arith.constant 0 : i32
    %c0_i32_0 = arith.constant 0 : i32
    %c0_i32_1 = arith.constant 0 : i32
    return %arg0, %c0_i32, %c0_i32_0 : i32, i32, i32
  }
}

module attributes {stable_mosaic.version = 11 : i64} {
  func.func @_sha_kernel(%arg0: i32, %arg1: memref<4x8x32xf32, #tpu.memory_space<vmem>>, %arg2: memref<4x8x32xf32, #tpu.memory_space<vmem>>, %arg3: memref<4x8x32xf32, #tpu.memory_space<vmem>>, %arg4: memref<32x32xf32, #tpu.memory_space<vmem>>, %arg5: memref<1x32xf32, #tpu.memory_space<vmem>>, %arg6: memref<32x32xf32, #tpu.memory_space<vmem>>, %arg7: memref<1x32xf32, #tpu.memory_space<vmem>>, %arg8: memref<32x32xf32, #tpu.memory_space<vmem>>, %arg9: memref<1x32xf32, #tpu.memory_space<vmem>>, %arg10: memref<32x32xf32, #tpu.memory_space<vmem>>, %arg11: memref<1x32xf32, #tpu.memory_space<vmem>>, %arg12: memref<4x8x32xf32, #tpu.memory_space<vmem>>, %arg13: memref<4x8x8xf32, #tpu.memory_space<vmem>>) attributes {dimension_semantics = [#tpu.dimension_semantics<parallel>], iteration_bounds = array<i64: 1>, scalar_prefetch = 0 : i64, scratch_operands = 0 : i64, tpu.core_type = #tpu.core_type<tc>, window_params = [{transform_indices = @transform_0, window_bounds = array<i64: 4, 8, 32>}, {transform_indices = @transform_1, window_bounds = array<i64: 4, 8, 32>}, {transform_indices = @transform_2, window_bounds = array<i64: 4, 8, 32>}, {pipeline_mode = #tpu.pipeline_mode<synchronous>, transform_indices = @transform_3, window_bounds = array<i64: 32, 32>}, {pipeline_mode = #tpu.pipeline_mode<synchronous>, transform_indices = @transform_4, window_bounds = array<i64: 1, 32>}, {pipeline_mode = #tpu.pipeline_mode<synchronous>, transform_indices = @transform_5, window_bounds = array<i64: 32, 32>}, {pipeline_mode = #tpu.pipeline_mode<synchronous>, transform_indices = @transform_6, window_bounds = array<i64: 1, 32>}, {pipeline_mode = #tpu.pipeline_mode<synchronous>, transform_indices = @transform_7, window_bounds = array<i64: 32, 32>}, {pipeline_mode = #tpu.pipeline_mode<synchronous>, transform_indices = @transform_8, window_bounds = array<i64: 1, 32>}, {pipeline_mode = #tpu.pipeline_mode<synchronous>, transform_indices = @transform_9, window_bounds = array<i64: 32, 32>}, {pipeline_mode = #tpu.pipeline_mode<synchronous>, transform_indices = @transform_10, window_bounds = array<i64: 1, 32>}, {transform_indices = @transform_11, window_bounds = array<i64: 4, 8, 32>}, {transform_indices = @transform_12, window_bounds = array<i64: 4, 8, 8>}]} {
    %c0 = arith.constant 0 : index
    %c0_0 = arith.constant 0 : index
    %c0_1 = arith.constant 0 : index
    %0 = vector.load %arg1[%c0, %c0_0, %c0_1] : memref<4x8x32xf32, #tpu.memory_space<vmem>>, vector<4x8x32xf32>
    %1 = vector.shape_cast %0 : vector<4x8x32xf32> to vector<32x32xf32>
    %c0_2 = arith.constant 0 : index
    %c0_3 = arith.constant 0 : index
    %2 = vector.load %arg4[%c0_2, %c0_3] : memref<32x32xf32, #tpu.memory_space<vmem>>, vector<32x32xf32>
    %cst = arith.constant dense<0.000000e+00> : vector<32x32xf32>
    %3 = tpu.matmul %1, %2, %cst {dimension_numbers = #tpu.dot_dimension_numbers<[1], [0], [0], [1], [0, 0, 1, 1], [], []>} : vector<32x32xf32>, vector<32x32xf32>, vector<32x32xf32> -> vector<32x32xf32>
    %c0_4 = arith.constant 0 : index
    %c0_5 = arith.constant 0 : index
    %4 = vector.load %arg5[%c0_4, %c0_5] : memref<1x32xf32, #tpu.memory_space<vmem>>, vector<1x32xf32>
    %5 = vector.broadcast %4 : vector<1x32xf32> to vector<32x32xf32>
    %6 = arith.addf %3, %5 : vector<32x32xf32>
    %c0_6 = arith.constant 0 : index
    %c0_7 = arith.constant 0 : index
    %c0_8 = arith.constant 0 : index
    %7 = vector.load %arg2[%c0_6, %c0_7, %c0_8] : memref<4x8x32xf32, #tpu.memory_space<vmem>>, vector<4x8x32xf32>
    %8 = vector.shape_cast %7 : vector<4x8x32xf32> to vector<32x32xf32>
    %c0_9 = arith.constant 0 : index
    %c0_10 = arith.constant 0 : index
    %9 = vector.load %arg6[%c0_9, %c0_10] : memref<32x32xf32, #tpu.memory_space<vmem>>, vector<32x32xf32>
    %cst_11 = arith.constant dense<0.000000e+00> : vector<32x32xf32>
    %10 = tpu.matmul %8, %9, %cst_11 {dimension_numbers = #tpu.dot_dimension_numbers<[1], [0], [0], [1], [0, 0, 1, 1], [], []>} : vector<32x32xf32>, vector<32x32xf32>, vector<32x32xf32> -> vector<32x32xf32>
    %c0_12 = arith.constant 0 : index
    %c0_13 = arith.constant 0 : index
    %11 = vector.load %arg7[%c0_12, %c0_13] : memref<1x32xf32, #tpu.memory_space<vmem>>, vector<1x32xf32>
    %12 = vector.broadcast %11 : vector<1x32xf32> to vector<32x32xf32>
    %13 = arith.addf %10, %12 : vector<32x32xf32>
    %c0_14 = arith.constant 0 : index
    %c0_15 = arith.constant 0 : index
    %c0_16 = arith.constant 0 : index
    %14 = vector.load %arg3[%c0_14, %c0_15, %c0_16] : memref<4x8x32xf32, #tpu.memory_space<vmem>>, vector<4x8x32xf32>
    %15 = vector.shape_cast %14 : vector<4x8x32xf32> to vector<32x32xf32>
    %c0_17 = arith.constant 0 : index
    %c0_18 = arith.constant 0 : index
    %16 = vector.load %arg8[%c0_17, %c0_18] : memref<32x32xf32, #tpu.memory_space<vmem>>, vector<32x32xf32>
    %cst_19 = arith.constant dense<0.000000e+00> : vector<32x32xf32>
    %17 = tpu.matmul %15, %16, %cst_19 {dimension_numbers = #tpu.dot_dimension_numbers<[1], [0], [0], [1], [0, 0, 1, 1], [], []>} : vector<32x32xf32>, vector<32x32xf32>, vector<32x32xf32> -> vector<32x32xf32>
    %c0_20 = arith.constant 0 : index
    %c0_21 = arith.constant 0 : index
    %18 = vector.load %arg9[%c0_20, %c0_21] : memref<1x32xf32, #tpu.memory_space<vmem>>, vector<1x32xf32>
    %19 = vector.broadcast %18 : vector<1x32xf32> to vector<32x32xf32>
    %20 = arith.addf %17, %19 : vector<32x32xf32>
    %21 = vector.shape_cast %6 : vector<32x32xf32> to vector<4x8x32xf32>
    %22 = vector.shape_cast %13 : vector<32x32xf32> to vector<4x8x32xf32>
    %23 = vector.shape_cast %20 : vector<32x32xf32> to vector<4x8x32xf32>
    "tpu.trace_start"() <{level = 10 : i32, message = "btp,bsp->bts"}> : () -> ()
    %cst_22 = arith.constant dense<0.000000e+00> : vector<4x8x8xf32>
    %24 = tpu.matmul %21, %22, %cst_22 {dimension_numbers = #tpu.dot_dimension_numbers<[2], [2], [1], [1], [0, 0, 0, 1, 1, 1], [0], [0]>} : vector<4x8x32xf32>, vector<4x8x32xf32>, vector<4x8x8xf32> -> vector<4x8x8xf32>
    "tpu.trace_stop"() : () -> ()
    %cst_23 = arith.constant dense<0xFF800000> : vector<4x8xf32>
    %25 = vector.multi_reduction <maximumf>, %24, %cst_23 [2] : vector<4x8x8xf32> to vector<4x8xf32>
    %26 = vector.shape_cast %25 : vector<4x8xf32> to vector<4x8x1xf32>
    %27 = vector.broadcast %26 : vector<4x8x1xf32> to vector<4x8x8xf32>
    %28 = arith.subf %24, %27 : vector<4x8x8xf32>
    %29 = math.exp %28 : vector<4x8x8xf32>
    %cst_24 = arith.constant dense<0.000000e+00> : vector<4x8xf32>
    %30 = vector.multi_reduction <add>, %29, %cst_24 [2] : vector<4x8x8xf32> to vector<4x8xf32>
    %31 = vector.shape_cast %30 : vector<4x8xf32> to vector<4x8x1xf32>
    %32 = tpu.reciprocal %31 {approx = true} : vector<4x8x1xf32> -> vector<4x8x1xf32>
    %33 = arith.mulf %31, %32 : vector<4x8x1xf32>
    %cst_25 = arith.constant 2.000000e+00 : f32
    %34 = vector.broadcast %cst_25 : f32 to vector<4x8x1xf32>
    %35 = arith.subf %34, %33 : vector<4x8x1xf32>
    %36 = arith.mulf %32, %35 : vector<4x8x1xf32>
    %37 = vector.broadcast %36 : vector<4x8x1xf32> to vector<4x8x8xf32>
    %38 = arith.mulf %29, %37 : vector<4x8x8xf32>
    %c0_26 = arith.constant 0 : index
    %c0_27 = arith.constant 0 : index
    %c0_28 = arith.constant 0 : index
    %39 = vector.load %arg13[%c0_26, %c0_27, %c0_28] : memref<4x8x8xf32, #tpu.memory_space<vmem>>, vector<4x8x8xf32>
    tpu.vector_store %arg13[%c0_26, %c0_27, %c0_28], %38 {strides = array<i32>} : memref<4x8x8xf32, #tpu.memory_space<vmem>>, vector<4x8x8xf32>,
    "tpu.trace_start"() <{level = 10 : i32, message = "bts,bsp->btp"}> : () -> ()
    %cst_29 = arith.constant dense<0.000000e+00> : vector<4x8x32xf32>
    %40 = tpu.matmul %38, %23, %cst_29 {dimension_numbers = #tpu.dot_dimension_numbers<[2], [1], [1], [2], [0, 0, 0, 1, 1, 2], [0], [0]>} : vector<4x8x8xf32>, vector<4x8x32xf32>, vector<4x8x32xf32> -> vector<4x8x32xf32>
    "tpu.trace_stop"() : () -> ()
    %41 = vector.shape_cast %40 : vector<4x8x32xf32> to vector<32x32xf32>
    %c0_30 = arith.constant 0 : index
    %c0_31 = arith.constant 0 : index
    %42 = vector.load %arg10[%c0_30, %c0_31] : memref<32x32xf32, #tpu.memory_space<vmem>>, vector<32x32xf32>
    %cst_32 = arith.constant dense<0.000000e+00> : vector<32x32xf32>
    %43 = tpu.matmul %41, %42, %cst_32 {dimension_numbers = #tpu.dot_dimension_numbers<[1], [0], [0], [1], [0, 0, 1, 1], [], []>} : vector<32x32xf32>, vector<32x32xf32>, vector<32x32xf32> -> vector<32x32xf32>
    %c0_33 = arith.constant 0 : index
    %c0_34 = arith.constant 0 : index
    %44 = vector.load %arg11[%c0_33, %c0_34] : memref<1x32xf32, #tpu.memory_space<vmem>>, vector<1x32xf32>
    %45 = vector.broadcast %44 : vector<1x32xf32> to vector<32x32xf32>
    %46 = arith.addf %43, %45 : vector<32x32xf32>
    %47 = vector.shape_cast %46 : vector<32x32xf32> to vector<4x8x32xf32>
    %c0_35 = arith.constant 0 : index
    %c0_36 = arith.constant 0 : index
    %c0_37 = arith.constant 0 : index
    %48 = vector.load %arg12[%c0_35, %c0_36, %c0_37] : memref<4x8x32xf32, #tpu.memory_space<vmem>>, vector<4x8x32xf32>
    tpu.vector_store %arg12[%c0_35, %c0_36, %c0_37], %47 {strides = array<i32>} : memref<4x8x32xf32, #tpu.memory_space<vmem>>, vector<4x8x32xf32>,
    return
  }
  func.func @transform_0(%arg0: i32) -> (i32, i32, i32) {
    %c0_i32 = arith.constant 0 : i32
    %c0_i32_0 = arith.constant 0 : i32
    %c0_i32_1 = arith.constant 0 : i32
    return %arg0, %c0_i32, %c0_i32_0 : i32, i32, i32
  }
  func.func @transform_1(%arg0: i32) -> (i32, i32, i32) {
    %c0_i32 = arith.constant 0 : i32
    %c0_i32_0 = arith.constant 0 : i32
    %c0_i32_1 = arith.constant 0 : i32
    return %arg0, %c0_i32, %c0_i32_0 : i32, i32, i32
  }
  func.func @transform_2(%arg0: i32) -> (i32, i32, i32) {
    %c0_i32 = arith.constant 0 : i32
    %c0_i32_0 = arith.constant 0 : i32
    %c0_i32_1 = arith.constant 0 : i32
    return %arg0, %c0_i32, %c0_i32_0 : i32, i32, i32
  }
  func.func @transform_3(%arg0: i32) -> (i32, i32) {
    %c0_i32 = arith.constant 0 : i32
    %c0_i32_0 = arith.constant 0 : i32
    %c0_i32_1 = arith.constant 0 : i32
    return %c0_i32, %c0_i32_0 : i32, i32
  }
  func.func @transform_4(%arg0: i32) -> (i32, i32) {
    %c0_i32 = arith.constant 0 : i32
    %c0_i32_0 = arith.constant 0 : i32
    %c0_i32_1 = arith.constant 0 : i32
    return %c0_i32, %c0_i32_0 : i32, i32
  }
  func.func @transform_5(%arg0: i32) -> (i32, i32) {
    %c0_i32 = arith.constant 0 : i32
    %c0_i32_0 = arith.constant 0 : i32
    %c0_i32_1 = arith.constant 0 : i32
    return %c0_i32, %c0_i32_0 : i32, i32
  }
  func.func @transform_6(%arg0: i32) -> (i32, i32) {
    %c0_i32 = arith.constant 0 : i32
    %c0_i32_0 = arith.constant 0 : i32
    %c0_i32_1 = arith.constant 0 : i32
    return %c0_i32, %c0_i32_0 : i32, i32
  }
  func.func @transform_7(%arg0: i32) -> (i32, i32) {
    %c0_i32 = arith.constant 0 : i32
    %c0_i32_0 = arith.constant 0 : i32
    %c0_i32_1 = arith.constant 0 : i32
    return %c0_i32, %c0_i32_0 : i32, i32
  }
  func.func @transform_8(%arg0: i32) -> (i32, i32) {
    %c0_i32 = arith.constant 0 : i32
    %c0_i32_0 = arith.constant 0 : i32
    %c0_i32_1 = arith.constant 0 : i32
    return %c0_i32, %c0_i32_0 : i32, i32
  }
  func.func @transform_9(%arg0: i32) -> (i32, i32) {
    %c0_i32 = arith.constant 0 : i32
    %c0_i32_0 = arith.constant 0 : i32
    %c0_i32_1 = arith.constant 0 : i32
    return %c0_i32, %c0_i32_0 : i32, i32
  }
  func.func @transform_10(%arg0: i32) -> (i32, i32) {
    %c0_i32 = arith.constant 0 : i32
    %c0_i32_0 = arith.constant 0 : i32
    %c0_i32_1 = arith.constant 0 : i32
    return %c0_i32, %c0_i32_0 : i32, i32
  }
  func.func @transform_11(%arg0: i32) -> (i32, i32, i32) {
    %c0_i32 = arith.constant 0 : i32
    %c0_i32_0 = arith.constant 0 : i32
    %c0_i32_1 = arith.constant 0 : i32
    return %arg0, %c0_i32, %c0_i32_0 : i32, i32, i32
  }
  func.func @transform_12(%arg0: i32) -> (i32, i32, i32) {
    %c0_i32 = arith.constant 0 : i32
    %c0_i32_0 = arith.constant 0 : i32
    %c0_i32_1 = arith.constant 0 : i32
    return %arg0, %c0_i32, %c0_i32_0 : i32, i32, i32
  }
}

</mosaic_0001>

<bundles_post_ra>
// kernel: tpu_custom_call.1
= control target key start
LH: loop header
LB: loop body
LE: loop exit
PB: predicated region body
PF: predicated region fallthrough
CT: control target
= control target key end

     0   :  { %18 = vsyncpa [#allocation3], 0  ;;  %s2050_s0 = inlined_call_operand.hbm [shape: f32[4,8,32], index: 0, kind: input, shape index: {}]   ;;  %s2051_s1 = inlined_call_operand.hbm [shape: f32[4,8,32], index: 1, kind: input, shape index: {}]   ;;  %s2052_s2 = inlined_call_operand.hbm [shape: f32[4,8,32], index: 2, kind: input, shape index: {}]   ;;  %s2053_s3 = inlined_call_operand.hbm [shape: f32[32,32], index: 3, kind: input, shape index: {}]   ;;  %s2054_s4 = inlined_call_operand.vmem [shape: f32[1,32], index: 4, kind: input, shape index: {}]   ;;  %s2055_s5 = inlined_call_operand.hbm [shape: f32[32,32], index: 5, kind: input, shape index: {}]   ;;  %s2056_s6 = inlined_call_operand.vmem [shape: f32[1,32], index: 6, kind: input, shape index: {}]   ;;  %s2057_s7 = inlined_call_operand.hbm [shape: f32[32,32], index: 7, kind: input, shape index: {}]   ;;  %s2058_s8 = inlined_call_operand.hbm [shape: f32[1,32], index: 8, kind: input, shape index: {}]   ;;  %s2059_s9 = inlined_call_operand.vmem [shape: f32[32,32], index: 9, kind: input, shape index: {}]   ;;  %s2060_s10 = inlined_call_operand.vmem [shape: f32[1,32], index: 10, kind: input, shape index: {}]   ;;  %s2061_s11 = inlined_call_operand.hbm [shape: f32[4,8,32], index: 11, kind: output, shape index: {0}]   ;;  %s2062_s12 = inlined_call_operand.hbm [shape: f32[4,8,8], index: 12, kind: output, shape index: {1}]  }
   0x1   :  { %19 = vsyncpa [#allocation6], 0 }
   0x2   :  { %20 = vsyncpa [#allocation9], 0 }
   0x3   :  { %21 = vsyncpa [#allocation12], 0 }
   0x4   :  { %22 = vsyncpa [#allocation4], 0 }
   0x5   :  { %23 = vsyncpa [#allocation16], 0  ;;  %s1724_s21 = smov [#allocation5]   ;;  %s1725_s23 = smov [#allocation8]  }
   0x6   :  { %s41_s22 = sshll.u32 %s1724_s21, 4  ;;  %s65_s24 = sshll.u32 %s1725_s23, 4  ;;  %s42_s22 = int_to_ptr.vmem [resolvable:$true] %s41_s22  ;;  %s1802_s24 = int_to_ptr.vmem [resolvable:$true] %s65_s24 }
   0x7   :  { %s1514_s27 = scalar_lea.hbm %s2051_s1, 512 }
   0x8   :  { %p1515_p0 = scmp.ne.s32.totalorder %s2051_s1, %s1514_s27  ;;  %p1518_p1 = scmp.lt.u32.totalorder %s1514_s27, %s2051_s1 }
   0xa   :  { %p1520_p2 = pnand %p1518_p1, %p1515_p0 }
   0xc   :  { %1523 = shalt.err (!%p1520_p2)
}
   0xd   :  { %s1524_s14 = scalar_lea.vmem %s42_s22, 512  ;;  %p1529_p4 = scmp.lt.s32.totalorder %s42_s22, %s42_s22 }
   0xe   :  { %p1525_p3 = scmp.ne.s32.totalorder %s42_s22, %s1524_s14  ;;  %p1530_p5 = scmp.lt.s32.totalorder %s1524_s14, %s1524_s14 }
  0x10   :  { %p1531_p6 = por %p1530_p5, %p1529_p4 }
  0x12   :  { %p1532_p7 = pnand %p1531_p6, %p1525_p3 }
  0x14   :  { %1535 = shalt.err (!%p1532_p7)
}
  0x15   :  { %s1726_s15 = smov 128   ;;  %s1727_s16 = smov 8  }
  0x16   :  { %47 = dma.hbm_to_vmem [thread:$0]  %s2051_s1, 512, %s42_s22, [#allocation6], %s1726_s15, %s1726_s15, %s1727_s16  }
  0x17   :  { %s1536_s21 = scalar_lea.hbm %s2053_s3, 512 }
  0x18   :  { %p1537_p8 = scmp.ne.s32.totalorder %s2053_s3, %s1536_s21  ;;  %p1540_p9 = scmp.lt.u32.totalorder %s1536_s21, %s2053_s3 }
  0x1a   :  { %p1542_p10 = pnand %p1540_p9, %p1537_p8 }
  0x1c   :  { %1545 = shalt.err (!%p1542_p10)
}
  0x1d   :  { %s1546_s28 = scalar_lea.vmem %s1802_s24, 512  ;;  %p1551_p12 = scmp.lt.s32.totalorder %s1802_s24, %s1802_s24 }
  0x1e   :  { %p1547_p11 = scmp.ne.s32.totalorder %s1802_s24, %s1546_s28  ;;  %p1552_p13 = scmp.lt.s32.totalorder %s1546_s28, %s1546_s28 }
  0x20   :  { %p1553_p0 = por %p1552_p13, %p1551_p12 }
  0x22   :  { %p1554_p1 = pnand %p1553_p0, %p1547_p11 }
  0x24   :  { %1557 = shalt.err (!%p1554_p1)
}
  0x25   :  { %71 = dma.hbm_to_vmem [thread:$0]  %s2053_s3, 512, %s1802_s24, [#allocation9], %s1726_s15, %s1726_s15, %s1727_s16  }
  0x26   :  { %s1728_s29 = smov [#allocation11]   ;;  %s1729_s13 = smov [#allocation2]  }
  0x27   :  { %s93_s30 = sshll.u32 %s1728_s29, 4  ;;  %s29_s14 = sshll.u32 %s1729_s13, 4  ;;  %s94_s30 = int_to_ptr.vmem [resolvable:$true] %s93_s30  ;;  %s1839_s14 = int_to_ptr.vmem [resolvable:$true] %s29_s14 }
  0x28   :  { %s1558_s19 = scalar_lea.hbm %s2057_s7, 512 }
  0x29   :  { %p1559_p2 = scmp.ne.s32.totalorder %s2057_s7, %s1558_s19  ;;  %p1562_p3 = scmp.lt.u32.totalorder %s1558_s19, %s2057_s7 }
  0x2b   :  { %p1564_p4 = pnand %p1562_p3, %p1559_p2 }
  0x2d   :  { %1567 = shalt.err (!%p1564_p4)
}
  0x2e   :  { %s1568_s3 = scalar_lea.vmem %s94_s30, 512  ;;  %p1573_p6 = scmp.lt.s32.totalorder %s94_s30, %s94_s30 }
  0x2f   :  { %p1569_p5 = scmp.ne.s32.totalorder %s94_s30, %s1568_s3  ;;  %p1574_p7 = scmp.lt.s32.totalorder %s1568_s3, %s1568_s3 }
  0x31   :  { %p1575_p8 = por %p1574_p7, %p1573_p6 }
  0x33   :  { %p1576_p9 = pnand %p1575_p8, %p1569_p5 }
  0x35   :  { %1579 = shalt.err (!%p1576_p9)
}
  0x36   :  { %99 = dma.hbm_to_vmem [thread:$0]  %s2057_s7, 512, %s94_s30, [#allocation12], %s1726_s15, %s1726_s15, %s1727_s16  }
  0x37   :  { %s1580_s1 = scalar_lea.hbm %s2050_s0, 512 }
  0x38   :  { %p1581_p10 = scmp.ne.s32.totalorder %s2050_s0, %s1580_s1  ;;  %p1584_p11 = scmp.lt.u32.totalorder %s1580_s1, %s2050_s0 }
  0x3a   :  { %p1586_p12 = pnand %p1584_p11, %p1581_p10 }
  0x3c   :  { %1589 = shalt.err (!%p1586_p12)
}
  0x3d   :  { %s1590_s18 = scalar_lea.vmem %s1839_s14, 512  ;;  %p1595_p0 = scmp.lt.s32.totalorder %s1839_s14, %s1839_s14 }
  0x3e   :  { %p1591_p13 = scmp.ne.s32.totalorder %s1839_s14, %s1590_s18  ;;  %p1596_p1 = scmp.lt.s32.totalorder %s1590_s18, %s1590_s18 }
  0x40   :  { %p1597_p2 = por %p1596_p1, %p1595_p0 }
  0x42   :  { %p1598_p3 = pnand %p1597_p2, %p1591_p13 }
  0x44   :  { %1601 = shalt.err (!%p1598_p3)
}
  0x45   :  { %35 = dma.hbm_to_vmem [thread:$0]  %s2050_s0, 512, %s1839_s14, [#allocation3], %s1726_s15, %s1726_s15, %s1727_s16  }
  0x46   :  { %s1730_s19 = smov [#allocation7]   ;;  %s1731_s21 = smov [#allocation10]  }
  0x47   :  { %s53_s20 = sshll.u32 %s1730_s19, 4  ;;  %s79_s23 = sshll.u32 %s1731_s21, 4  ;;  %s54_s20 = int_to_ptr.vmem [resolvable:$true] %s53_s20  ;;  %s1876_s23 = int_to_ptr.vmem [resolvable:$true] %s79_s23 }
  0x48   :  { %s1602_s24 = scalar_lea.hbm %s2052_s2, 512 }
  0x49   :  { %p1603_p4 = scmp.ne.s32.totalorder %s2052_s2, %s1602_s24  ;;  %p1606_p5 = scmp.lt.u32.totalorder %s1602_s24, %s2052_s2 }
  0x4b   :  { %p1608_p6 = pnand %p1606_p5, %p1603_p4 }
  0x4d   :  { %1611 = shalt.err (!%p1608_p6)
}
  0x4e   :  { %s1612_s0 = scalar_lea.vmem %s54_s20, 512  ;;  %p1617_p8 = scmp.lt.s32.totalorder %s54_s20, %s54_s20 }
  0x4f   :  { %p1613_p7 = scmp.ne.s32.totalorder %s54_s20, %s1612_s0  ;;  %p1618_p9 = scmp.lt.s32.totalorder %s1612_s0, %s1612_s0 }
  0x51   :  { %p1619_p10 = por %p1618_p9, %p1617_p8 }
  0x53   :  { %p1620_p11 = pnand %p1619_p10, %p1613_p7 }
  0x55   :  { %1623 = shalt.err (!%p1620_p11)
}
  0x56   :  { %59 = dma.hbm_to_vmem [thread:$0]  %s2052_s2, 512, %s54_s20, [#allocation6], %s1726_s15, %s1726_s15, %s1727_s16  }
  0x57   :  { %s1624_s17 = scalar_lea.hbm %s2055_s5, 512 }
  0x58   :  { %p1625_p12 = scmp.ne.s32.totalorder %s2055_s5, %s1624_s17  ;;  %p1628_p13 = scmp.lt.u32.totalorder %s1624_s17, %s2055_s5 }
  0x5a   :  { %p1630_p0 = pnand %p1628_p13, %p1625_p12 }
  0x5c   :  { %1633 = shalt.err (!%p1630_p0)
}
  0x5d   :  { %s1634_s21 = scalar_lea.vmem %s1876_s23, 512  ;;  %p1639_p2 = scmp.lt.s32.totalorder %s1876_s23, %s1876_s23 }
  0x5e   :  { %p1635_p1 = scmp.ne.s32.totalorder %s1876_s23, %s1634_s21  ;;  %p1640_p3 = scmp.lt.s32.totalorder %s1634_s21, %s1634_s21 }
  0x60   :  { %p1641_p4 = por %p1640_p3, %p1639_p2 }
  0x62   :  { %p1642_p5 = pnand %p1641_p4, %p1635_p1 }
  0x64   :  { %1645 = shalt.err (!%p1642_p5)
}
  0x65   :  { %85 = dma.hbm_to_vmem [thread:$0]  %s2055_s5, 512, %s1876_s23, [#allocation9], %s1726_s15, %s1726_s15, %s1727_s16  }
  0x66   :  { %s1732_s25 = smov [#allocation13]   ;;  %s1646_s27 = scalar_lea.hbm %s2058_s8, 16 }
  0x67   :  { %s106_s3 = sshll.u32 %s1732_s25, 4  ;;  %p1647_p6 = scmp.ne.s32.totalorder %s2058_s8, %s1646_s27  ;;  %s107_s3 = int_to_ptr.vmem [resolvable:$true] %s106_s3 }
  0x68   :  { %p1650_p7 = scmp.lt.u32.totalorder %s1646_s27, %s2058_s8 }
  0x6a   :  { %p1652_p8 = pnand %p1650_p7, %p1647_p6 }
  0x6c   :  { %1655 = shalt.err (!%p1652_p8)
}
  0x6d   :  { %s1656_s22 = scalar_lea.vmem %s107_s3, 16  ;;  %s1660_s5 = scalar_lea.vmem %s107_s3, 32 }
  0x6e   :  { %p1657_p9 = scmp.ne.s32.totalorder %s107_s3, %s1656_s22  ;;  %p1661_p10 = scmp.lt.s32.totalorder %s107_s3, %s107_s3 }
  0x6f   :  { %p1662_p11 = scmp.lt.s32.totalorder %s1660_s5, %s1656_s22 }
  0x71   :  { %p1663_p12 = por %p1662_p11, %p1661_p10 }
  0x73   :  { %p1664_p13 = pnand %p1663_p12, %p1657_p9 }
  0x75   :  { %1667 = shalt.err (!%p1664_p13)
}
  0x76   :  { %109 = dma.hbm_to_vmem [thread:$0]  %s2058_s8, 16, %s107_s3, [#allocation12]  }
  0x77   :  { %1712 = dma.done.wait [#allocation3], 512  }
  0x78   :  { %1713 = vsyncadd [#allocation3], 4294966784 }
  0x79   :  { %1714 = dma.done.wait [#allocation6], 1024  }
  0x7a   :  { %1715 = vsyncadd [#allocation6], 4294966272 }
  0x7b   :  { %1716 = dma.done.wait [#allocation9], 1024  }
  0x7c   :  { %1717 = vsyncadd [#allocation9], 4294966272 }
  0x7d   :  { %1718 = dma.done.wait [#allocation12], 528  }
  0x7e   :  { %1719 = vsyncadd [#allocation12], 4294966768  ;;  %vm150_vm0 = vcmask 261120   ;;  %v139_v0 = vld [vmem:[#allocation8] sm:$0xff]  ;;  %v140_v1 = vld [vmem:[#allocation8 + $0x8] sm:$0xff]  ;;  %v1733_v28 = vmov 0.0  }
  0x7f   :  { %v141_v2 = vld [vmem:[#allocation8 + $0x10] sm:$0xff]  ;;  %v1453_v3 = vpack.c.bf16 %v140_v1, %v139_v0  ;;  %v142_v4 = vld [vmem:[#allocation8 + $0x18] sm:$0xff]  ;;  %v135_v5 = vld [vmem:[#allocation2] sm:$0xff]  ;;  %vm1734_vm1 = vmmov 0   ;;  %vm776_vm2 = vcmask 64512  }
  0x80   :  { %v1457_v6 = vpack.c.bf16 %v142_v4, %v141_v2  ;;  %1365 = vmatprep.mubr.msk.f32.mxu1 %vm150_vm0, %v135_v5  ;;  %v252_v7 = vld [vmem:[#allocation10] sm:$0xff]  ;;  %v253_v8 = vld [vmem:[#allocation10 + $0x8] sm:$0xff]  ;;  %v254_v10 = vld [vmem:[#allocation10 + $0x10] sm:$0xff] }
  0x81   :  { %1454 = vmatprep.subr.bf16.mxu1 %v1453_v3  ;;  %v1461_v9 = vpack.c.bf16 %v253_v8, %v252_v7  ;;  %v255_v11 = vld [vmem:[#allocation10 + $0x18] sm:$0xff]  ;;  %v136_v12 = vld [vmem:[#allocation2 + $0x8] sm:$0xff]  ;;  %v137_v13 = vld [vmem:[#allocation2 + $0x10] sm:$0xff] }
  0x82   :  { %1456 = vmatpush3.bf16.msra.mxu1 %v1453_v3  ;;  %v1465_v14 = vpack.c.bf16 %v255_v11, %v254_v10  ;;  %v138_v15 = vld [vmem:[#allocation2 + $0x18] sm:$0xff]  ;;  %v248_v16 = vld [vmem:[#allocation5] sm:$0xff]  ;;  %v249_v17 = vld [vmem:[#allocation5 + $0x8] sm:$0xff] }
  0x83   :  { %1458 = vmatprep.subr.bf16.mxu1 %v1457_v6  ;;  %v250_v18 = vld [vmem:[#allocation5 + $0x10] sm:$0xff]  ;;  %v251_v19 = vld [vmem:[#allocation5 + $0x18] sm:$0xff]  ;;  %v364_v20 = vld [vmem:[#allocation11] sm:$0xff] }
  0x84   :  { %v365_v21 = vld [vmem:[#allocation11 + $0x8] sm:$0xff]  ;;  %v366_v23 = vld [vmem:[#allocation11 + $0x10] sm:$0xff]  ;;  %v367_v24 = vld [vmem:[#allocation11 + $0x18] sm:$0xff] }
  0x85   :  { %v1469_v22 = vpack.c.bf16 %v365_v21, %v364_v20  ;;  %v1473_v25 = vpack.c.bf16 %v367_v24, %v366_v23  ;;  %v360_v26 = vld [vmem:[#allocation7] sm:$0xff]  ;;  %v361_v27 = vld [vmem:[#allocation7 + $0x8] sm:$0xff]  ;;  %v362_v29 = vld [vmem:[#allocation7 + $0x10] sm:$0xff] }
  0x86   :  { %1460 = vmatpush3.bf16.msra.mxu1 %v1457_v6  ;;  %1393 = vmatprep.mubr.msk.f32.mxu0 %vm150_vm0, %v360_v26  ;;  %v363_v30 = vld [vmem:[#allocation7 + $0x18] sm:$0xff]  ;;  %v1282_v35 = vld [vmem:[%s2056_s6] ss:$0 sm:$0xff] }
  0x87   :  { %1462 = vmatprep.subr.bf16.mxu1 %v1461_v9  ;;  %1470 = vmatprep.subr.bf16.mxu0 %v1469_v22  ;;  %v1277_v38 = vld [vmem:[%s2054_s4] ss:$0 sm:$0xff] }
  0x88   :  { %1472 = vmatpush3.bf16.msra.mxu0 %v1469_v22  ;;  %v1287_v49 = vld [vmem:[#allocation13] ss:$0 sm:$0xff] }
  0x89   :  { %1366 = vmatmul.mubr.msk.f32.vlgmr.msra.gmra.mrb[0].mxu1 %vm150_vm0, %v136_v12  ;;  %1474 = vmatprep.subr.bf16.mxu0 %v1473_v25 }
  0x8a   :  { %1464 = vmatpush3.bf16.msra.mxu1 %v1461_v9  ;;  %1368 = vmatprep.mubr.msk.f32.mxu1 %vm150_vm0, %v137_v13 }
  0x8b   :  { %1466 = vmatprep.subr.bf16.mxu1 %v1465_v14 }
  0x8c   :  { %1476 = vmatpush3.bf16.msra.mxu0 %v1473_v25 }
  0x8d   :  { %1369 = vmatmul.mubr.msk.f32.gmra.mrb[2].mxu1 %vm150_vm0, %v138_v15  ;;  %1409 = vmatprep.subr.mxu0 %v1733_v28 }
  0x8e   :  { %1468 = vmatpush3.bf16.msra.mxu1 %v1465_v14  ;;  %1379 = vmatprep.mubr.msk.f32.mxu1 %vm150_vm0, %v248_v16 }
  0x8f   :  { %1394 = vmatmul.mubr.msk.f32.vlgmr.msra.gmra.mrb[0].mxu0 %vm150_vm0, %v361_v27  ;;  %1399 = vmatprep.subr.mxu1 %v1733_v28 }
  0x90   :  { %1396 = vmatprep.mubr.msk.f32.mxu0 %vm150_vm0, %v362_v29 }
  0x91   :  { %1380 = vmatmul.mubr.msk.f32.vlgmr.msra.gmra.mrb[4].mxu1 %vm150_vm0, %v249_v17 }
  0x92   :  { %1382 = vmatprep.mubr.msk.f32.mxu1 %vm150_vm0, %v250_v18 }
  0x93   :  { %1397 = vmatmul.mubr.msk.f32.gmra.mrb[2].mxu0 %vm150_vm0, %v363_v30 }
  0x94   :  { %1411 = vmatprep.mubr.msk.f32.mxu0 %vm1734_vm1, %v1733_v28 }
  0x95   :  { %1383 = vmatmul.mubr.msk.f32.gmra.mrb[6].mxu1 %vm150_vm0, %v251_v19 }
  0x96   :  { %1401 = vmatprep.mubr.msk.f32.mxu1 %vm1734_vm1, %v1733_v28 }
 0x15c   :  { %v1367_v31 = vpop.f32.mrb[0].mxu1 }
 0x15d   :  { %v229_v32 = vpop.f32.mrb[1].mxu1  ;;  %v235_v45 = vadd.f32 %v1367_v31, %v1277_v38 }
 0x15e   :  { %v230_v41 = vadd.f32 %v1277_v38, %v229_v32 }
 0x160   :  { %v1370_v33 = vpop.f32.mrb[2].mxu1 }
 0x161   :  { %v239_v34 = vpop.f32.mrb[3].mxu1  ;;  %v245_v48 = vadd.f32 %v1370_v33, %v1277_v38 }
 0x162   :  { %v240_v46 = vadd.f32 %v1277_v38, %v239_v34  ;;  %v1395_v50 = vpop.f32.mrb[0].mxu0 }
 0x163   :  { %v459_v51 = vadd.f32 %v1395_v50, %v1287_v49  ;;  %v453_v52 = vpop.f32.mrb[1].mxu0 }
 0x164   :  { %v1381_v36 = vpop.f32.mrb[4].mxu1  ;;  %v454_v53 = vadd.f32 %v1287_v49, %v453_v52 }
 0x165   :  { %v341_v37 = vpop.f32.mrb[5].mxu1  ;;  %v347_v43 = vadd.f32 %v1381_v36, %v1282_v35  ;;  %v1130_v36 = vld [vmem:[%s2059_s9 + $0x8] sm:$0xff] }
 0x166   :  { %v342_v39 = vadd.f32 %v1282_v35, %v341_v37  ;;  %v1398_v54 = vpop.f32.mrb[2].mxu0 }
 0x167   :  { %v463_v55 = vpop.f32.mrb[3].mxu0  ;;  %v1971_v56 = vadd.f32 %v1398_v54, %v1287_v49  ;;  %v1131_v54 = vld [vmem:[%s2059_s9 + $0x10] sm:$0xff] }
 0x168   :  { %v1384_v40 = vpop.f32.mrb[6].mxu1  ;;  %1400 = vmatpush3.xpose.msk.msra.mxu1 %vm150_vm0, %v342_v39  ;;  %v1973_v57 = vadd.f32 %v1287_v49, %v463_v55  ;;  %v1132_v55 = vld [vmem:[%s2059_s9 + $0x18] sm:$0xff] }
 0x169   :  { %v351_v42 = vpop.f32.mrb[7].mxu1  ;;  %1404 = vmatprep.subr.mxu1 %v1733_v28  ;;  %v357_v47 = vadd.f32 %v1384_v40, %v1282_v35 }
 0x16a   :  { %v352_v44 = vadd.f32 %v1282_v35, %v351_v42  ;;  %v1129_v35 = vld [vmem:[%s2059_s9] sm:$0xff]  ;;  %s1735_s9 = smov [#allocation15]  }
 0x16b   :  { %1402 = vmatmul.mubr.msk.f32.vlgmr.msra.gmra.mrb[8].mxu1 %vm150_vm0, %v230_v41  ;;  %s1258_s25 = sshll.u32 %s1735_s9, 4  ;;  %s1259_s25 = int_to_ptr.vmem [resolvable:$true] %s1258_s25 }
 0x16c   :  { %1405 = vmatpush3.xpose.msk.msra.mxu1 %vm150_vm0, %v347_v43  ;;  %1410 = vmatpush3.xpose.msk.msra.mxu0 %vm150_vm0, %v352_v44  ;;  %v1477_v43 = vpack.c.bf16 %v1130_v36, %v1129_v35  ;;  %s1668_s3 = scalar_lea.vmem %s1259_s25, 512  ;;  %p1673_p1 = scmp.lt.s32.totalorder %s1259_s25, %s1259_s25 }
 0x16d   :  { %1406 = vmatprep.mubr.msk.f32.mxu1 %vm1734_vm1, %v1733_v28  ;;  %1414 = vmatprep.subr.mxu1 %v1733_v28  ;;  %p1669_p0 = scmp.ne.s32.totalorder %s1259_s25, %s1668_s3  ;;  %p1674_p2 = scmp.lt.s32.totalorder %s1668_s3, %s1668_s3 }
 0x16e   :  { %1419 = vmatprep.subr.mxu0 %v1733_v28 }
 0x16f   :  { %1407 = vmatmul.mubr.msk.f32.vlgmr.msra.gmra.mrb[10].mxu1 %vm150_vm0, %v235_v45  ;;  %1412 = vmatmul.mubr.msk.f32.vlgmr.msra.gmra.mrb[4].mxu0 %vm150_vm0, %v240_v46  ;;  %p1675_p3 = por %p1674_p2, %p1673_p1 }
 0x170   :  { %1415 = vmatpush3.xpose.msk.msra.mxu1 %vm150_vm0, %v357_v47  ;;  %1416 = vmatprep.mubr.msk.f32.mxu1 %vm1734_vm1, %v1733_v28 }
 0x171   :  { %1424 = vmatprep.subr.mxu1 %v1733_v28  ;;  %1421 = vmatprep.mubr.msk.f32.mxu0 %vm1734_vm1, %v1733_v28  ;;  %p1676_p4 = pnand %p1675_p3, %p1669_p0 }
 0x172   :  { %1420 = vmatpush3.msra.mxu0 %v454_v53 }
 0x173   :  { %1417 = vmatmul.mubr.msk.f32.vlgmr.msra.gmra.mrb[12].mxu1 %vm150_vm0, %v245_v48  ;;  %1429 = vmatprep.subr.mxu0 %v1733_v28 }
 0x174   :  { %1426 = vmatprep.mubr.msk.f32.mxu1 %vm1734_vm1, %v1733_v28  ;;  %1425 = vmatpush3.msra.mxu1 %v459_v51 }
 0x175   :  { %1434 = vmatprep.subr.mxu1 %v1733_v28 }
 0x23e   :  { %v544_v58 = vpop.f32.mrb[8].mxu1 }
 0x23f   :  { %v1403_v59 = vpop.f32.mrb[9].mxu1  ;;  %v777_v60 = vsel %vm776_vm2, %v544_v58, -inf }
 0x240   :  { %778 = vmax.xlane.f32.xlu0 %v777_v60 }
 0x242   :  { %v620_v61 = vpop.f32.mrb[10].mxu1  ;;  %v696_v62 = vpop.f32.mrb[4].mxu0 }
 0x243   :  { %v1408_v63 = vpop.f32.mrb[11].mxu1  ;;  %v1413_v0 = vpop.f32.mrb[5].mxu0  ;;  %v783_v1 = vsel %vm776_vm2, %v696_v62, -inf  ;;  %v780_v2 = vsel %vm776_vm2, %v620_v61, -inf }
 0x244   :  { %784 = vmax.xlane.f32.xlu1 %v783_v1  ;;  %781 = vmax.xlane.f32.xlu0 %v780_v2 }
 0x246   :  { %v772_v3 = vpop.f32.mrb[12].mxu1 }
 0x247   :  { %v1418_v4 = vpop.f32.mrb[13].mxu1  ;;  %v786_v5 = vsel %vm776_vm2, %v772_v3, -inf }
 0x248   :  { %787 = vmax.xlane.f32.xlu1 %v786_v5 }
 0x2cd   :  { %v779_v6 = vpop.xlane.xlu0 %778 }
 0x2ce   :  { %v789_v7 = vsub.f32 %v544_v58, %v779_v6 }
 0x2d0   :  { %v793_v8 = vmul.f32 1.442695, %v789_v7 }
 0x2d1   :  { %v785_v9 = vpop.xlane.xlu1 %784  ;;  %v782_v10 = vpop.xlane.xlu0 %781 }
 0x2d2   :  { %1498 = vpow2.f32 %v793_v8  ;;  %v791_v11 = vsub.f32 %v696_v62, %v785_v9  ;;  %v790_v12 = vsub.f32 %v620_v61, %v782_v10 }
 0x2d4   :  { %v797_v13 = vmul.f32 1.442695, %v791_v11  ;;  %v795_v14 = vmul.f32 1.442695, %v790_v12 }
 0x2d5   :  { %v788_v15 = vpop.xlane.xlu1 %787 }
 0x2d6   :  { %1500 = vpow2.f32 %v797_v13  ;;  %v792_v16 = vsub.f32 %v772_v3, %v788_v15 }
 0x2d7   :  { %1502 = vpow2.f32 %v795_v14 }
 0x2d8   :  { %v799_v17 = vmul.f32 1.442695, %v792_v16 }
 0x2da   :  { %1504 = vpow2.f32 %v799_v17 }
 0x2dc   :  { %v1499_v18 = vpop.eup %1498 }
 0x2dd   :  { %v801_v19 = vsel %vm776_vm2, %v1499_v18, 0.0 }
 0x2de   :  { %802 = vadd.xlane.f32.xlu0 %v801_v19 }
 0x2e0   :  { %v1501_v20 = vpop.eup %1500 }
 0x2e1   :  { %v1503_v21 = vpop.eup %1502  ;;  %v807_v22 = vsel %vm776_vm2, %v1501_v20, 0.0 }
 0x2e2   :  { %808 = vadd.xlane.f32.xlu0 %v807_v22  ;;  %v804_v23 = vsel %vm776_vm2, %v1503_v21, 0.0 }
 0x2e3   :  { %805 = vadd.xlane.f32.xlu1 %v804_v23 }
 0x2e4   :  { %v1505_v24 = vpop.eup %1504 }
 0x2e5   :  { %v810_v25 = vsel %vm776_vm2, %v1505_v24, 0.0 }
 0x2e7   :  { %811 = vadd.xlane.f32.xlu1 %v810_v25 }
 0x36b   :  { %v803_v26 = vpop.xlane.xlu0 %802 }
 0x36c   :  { %1506 = vrcp.f32 %v803_v26 }
 0x36f   :  { %v809_v27 = vpop.xlane.xlu0 %808 }
 0x370   :  { %1508 = vrcp.f32 %v809_v27  ;;  %v806_v29 = vpop.xlane.xlu1 %805 }
 0x371   :  { %1510 = vrcp.f32 %v806_v29 }
 0x374   :  { %v812_v30 = vpop.xlane.xlu1 %811 }
 0x375   :  { %1512 = vrcp.f32 %v812_v30 }
 0x376   :  { %v1507_v31 = vpop.eup %1506 }
 0x377   :  { %v817_v32 = vmul.f32 %v1507_v31, %v803_v26 }
 0x379   :  { %v821_v33 = vsub.f32 2.0, %v817_v32 }
 0x37a   :  { %v1509_v34 = vpop.eup %1508 }
 0x37b   :  { %v1511_v37 = vpop.eup %1510  ;;  %v825_v38 = vmul.f32 %v1507_v31, %v821_v33  ;;  %v819_v39 = vmul.f32 %v1509_v34, %v809_v27 }
 0x37c   :  { %v818_v40 = vmul.f32 %v1511_v37, %v806_v29 }
 0x37d   :  { %v829_v41 = vmul.f32 %v1499_v18, %v825_v38  ;;  %v823_v42 = vsub.f32 2.0, %v819_v39 }
 0x37e   :  { %v822_v44 = vsub.f32 2.0, %v818_v40 }
 0x37f   :  { %v1513_v45 = vpop.eup %1512  ;;  %833 = vst.msk [vmem:[#allocation15] sm:$0xff] %vm776_vm2, %v829_v41  ;;  %v827_v46 = vmul.f32 %v1509_v34, %v823_v42  ;;  %1422 = vmatmul.mubr.msk.f32.vlgmr.msra.gmra.mrb[6].mxu0 %vm776_vm2, %v829_v41 }
 0x380   :  { %v826_v47 = vmul.f32 %v1511_v37, %v822_v44  ;;  %v820_v48 = vmul.f32 %v1513_v45, %v812_v30  ;;  %1430 = vmatpush3.msra.mxu0 %v1973_v57  ;;  %1431 = vmatprep.mubr.msk.f32.mxu0 %vm1734_vm1, %v1733_v28  ;;  %v1481_v57 = vpack.c.bf16 %v1132_v55, %v1131_v54 }
 0x381   :  { %v831_v49 = vmul.f32 %v1501_v20, %v827_v46  ;;  %1478 = vmatprep.subr.bf16.mxu0 %v1477_v43 }
 0x382   :  { %v830_v50 = vmul.f32 %v1503_v21, %v826_v47  ;;  %v824_v51 = vsub.f32 2.0, %v820_v48 }
 0x383   :  { %835 = vst.msk [vmem:[#allocation15 + $0x10] sm:$0xff] %vm776_vm2, %v831_v49  ;;  %1432 = vmatmul.mubr.msk.f32.vlgmr.msra.gmra.mrb[8].mxu0 %vm776_vm2, %v831_v49 }
 0x384   :  { %834 = vst.msk [vmem:[#allocation15 + $0x8] sm:$0xff] %vm776_vm2, %v830_v50  ;;  %v828_v52 = vmul.f32 %v1513_v45, %v824_v51  ;;  %1427 = vmatmul.mubr.msk.f32.vlgmr.msra.gmra.mrb[14].mxu1 %vm776_vm2, %v830_v50  ;;  %1480 = vmatpush3.bf16.msra.mxu0 %v1477_v43 }
 0x385   :  { %1435 = vmatpush3.msra.mxu1 %v1971_v56  ;;  %1436 = vmatprep.mubr.msk.f32.mxu1 %vm1734_vm1, %v1733_v28 }
 0x386   :  { %v832_v53 = vmul.f32 %v1505_v24, %v828_v52  ;;  %1482 = vmatprep.subr.bf16.mxu0 %v1481_v57 }
 0x388   :  { %836 = vst.msk [vmem:[#allocation15 + $0x18] sm:$0xff] %vm776_vm2, %v832_v53  ;;  %1437 = vmatmul.mubr.msk.f32.vlgmr.msra.gmra.mrb[16].mxu1 %vm776_vm2, %v832_v53  ;;  %1484 = vmatpush3.bf16.msra.mxu0 %v1481_v57 }
 0x452   :  { %v906_v56 = vpop.f32.mrb[6].mxu0 }
 0x453   :  { %v1423_v58 = vpop.f32.mrb[7].mxu0  ;;  %1447 = vmatprep.mubr.msk.f32.mxu0 %vm150_vm0, %v906_v56 }
 0x456   :  { %v1052_v28 = vpop.f32.mrb[8].mxu0 }
 0x457   :  { %v979_v59 = vpop.f32.mrb[14].mxu1  ;;  %v1433_v60 = vpop.f32.mrb[9].mxu0 }
 0x458   :  { %v1428_v61 = vpop.f32.mrb[15].mxu1  ;;  %1448 = vmatmul.mubr.msk.f32.vlgmr.msra.gmra.mrb[10].mxu0 %vm150_vm0, %v979_v59 }
 0x459   :  { %1450 = vmatprep.mubr.msk.f32.mxu0 %vm150_vm0, %v1052_v28 }
 0x45b   :  { %v1125_v62 = vpop.f32.mrb[16].mxu1 }
 0x45c   :  { %v1438_v63 = vpop.f32.mrb[17].mxu1  ;;  %1451 = vmatmul.mubr.msk.f32.gmra.mrb[12].mxu0 %vm150_vm0, %v1125_v62 }
 0x45d   :  { %1679 = shalt.err (!%p1676_p4)
}
 0x45e   :  { %s1680_s27 = scalar_lea.hbm %s2062_s12, 512 }
 0x45f   :  { %p1681_p5 = scmp.ne.s32.totalorder %s2062_s12, %s1680_s27  ;;  %p1684_p6 = scmp.lt.u32.totalorder %s1680_s27, %s2062_s12 }
 0x461   :  { %p1686_p7 = pnand %p1684_p6, %p1681_p5 }
 0x463   :  { %1689 = shalt.err (!%p1686_p7)
}
 0x464   :  { %1264 = dma.vmem_to_hbm [thread:$0]  %s1259_s25, 512, %s2062_s12, [#allocation16], %s1726_s15, %s1726_s15, %s1727_s16  }
 0x465   :  { %v1304_v0 = vld [vmem:[%s2060_s10] ss:$0 sm:$0xff]  ;;  %s1736_s8 = smov [#allocation14]  }
 0x466   :  { %s1246_s13 = sshll.u32 %s1736_s8, 4  ;;  %s1247_s13 = int_to_ptr.vmem [resolvable:$true] %s1246_s13 }
 0x467   :  { %s1690_s10 = scalar_lea.vmem %s1247_s13, 512  ;;  %p1695_p9 = scmp.lt.s32.totalorder %s1247_s13, %s1247_s13 }
 0x468   :  { %p1691_p8 = scmp.ne.s32.totalorder %s1247_s13, %s1690_s10  ;;  %p1696_p10 = scmp.lt.s32.totalorder %s1690_s10, %s1690_s10 }
 0x46a   :  { %p1697_p11 = por %p1696_p10, %p1695_p9 }
 0x46c   :  { %p1698_p12 = pnand %p1697_p11, %p1691_p8 }
 0x52b   :  { %v1449_v1 = vpop.f32.mrb[10].mxu0 }
 0x52c   :  { %v1224_v2 = vadd.f32 %v1449_v1, %v1304_v0  ;;  %v1218_v3 = vpop.f32.mrb[11].mxu0 }
 0x52d   :  { %v1219_v4 = vadd.f32 %v1304_v0, %v1218_v3 }
 0x52e   :  { %1238 = vst.msk [vmem:[#allocation14 + $0x8] sm:$0xff] %vm150_vm0, %v1224_v2 }
 0x52f   :  { %1237 = vst.msk [vmem:[#allocation14] sm:$0xff] %vm150_vm0, %v1219_v4  ;;  %v1452_v5 = vpop.f32.mrb[12].mxu0 }
 0x530   :  { %v1234_v6 = vadd.f32 %v1452_v5, %v1304_v0  ;;  %v1228_v7 = vpop.f32.mrb[13].mxu0 }
 0x531   :  { %v1229_v8 = vadd.f32 %v1304_v0, %v1228_v7 }
 0x532   :  { %1240 = vst.msk [vmem:[#allocation14 + $0x18] sm:$0xff] %vm150_vm0, %v1234_v6 }
 0x533   :  { %1239 = vst.msk [vmem:[#allocation14 + $0x10] sm:$0xff] %vm150_vm0, %v1229_v8 }
 0x534   :  { %1701 = shalt.err (!%p1698_p12)
}
 0x535   :  { %s1702_s18 = scalar_lea.hbm %s2061_s11, 512 }
 0x536   :  { %p1703_p13 = scmp.ne.s32.totalorder %s2061_s11, %s1702_s18  ;;  %p1706_p0 = scmp.lt.u32.totalorder %s1702_s18, %s2061_s11 }
 0x538   :  { %p1708_p1 = pnand %p1706_p0, %p1703_p13 }
 0x53a   :  { %1711 = shalt.err (!%p1708_p1)
}
 0x53b   :  { %1252 = dma.vmem_to_hbm [thread:$0]  %s1247_s13, 512, %s2061_s11, [#allocation4], %s1726_s15, %s1726_s15, %s1727_s16  }
 0x53c   :  { %1720 = dma.done.wait [#allocation4], 512  }
 0x53d   :  { %1721 = vsyncadd [#allocation4], 4294966784 }
 0x53e   :  { %1722 = dma.done.wait [#allocation16], 512  }
 0x53f   :  { %1723 = vsyncadd [#allocation16], 4294966784 }
 0x540   :  { %1271 = vsyncpa [#allocation3], 1 }
 0x541   :  { %1272 = vsyncpa [#allocation6], 1 }
 0x542   :  { %1273 = vsyncpa [#allocation9], 1 }
 0x543   :  { %1274 = vsyncpa [#allocation12], 1 }
 0x544   :  { %1275 = vsyncpa [#allocation4], 1 }
 0x545   :  { %1276 = vsyncpa [#allocation16], 1 }

// kernel: tpu_custom_call.1
= control target key start
LH: loop header
LB: loop body
LE: loop exit
PB: predicated region body
PF: predicated region fallthrough
CT: control target
= control target key end

     0   :  { %18 = vsyncpa [#allocation3], 0  ;;  %s2050_s0 = inlined_call_operand.hbm [shape: f32[4,8,32], index: 0, kind: input, shape index: {}]   ;;  %s2051_s1 = inlined_call_operand.hbm [shape: f32[4,8,32], index: 1, kind: input, shape index: {}]   ;;  %s2052_s2 = inlined_call_operand.hbm [shape: f32[4,8,32], index: 2, kind: input, shape index: {}]   ;;  %s2053_s3 = inlined_call_operand.hbm [shape: f32[32,32], index: 3, kind: input, shape index: {}]   ;;  %s2054_s4 = inlined_call_operand.vmem [shape: f32[1,32], index: 4, kind: input, shape index: {}]   ;;  %s2055_s5 = inlined_call_operand.hbm [shape: f32[32,32], index: 5, kind: input, shape index: {}]   ;;  %s2056_s6 = inlined_call_operand.vmem [shape: f32[1,32], index: 6, kind: input, shape index: {}]   ;;  %s2057_s7 = inlined_call_operand.hbm [shape: f32[32,32], index: 7, kind: input, shape index: {}]   ;;  %s2058_s8 = inlined_call_operand.hbm [shape: f32[1,32], index: 8, kind: input, shape index: {}]   ;;  %s2059_s9 = inlined_call_operand.vmem [shape: f32[32,32], index: 9, kind: input, shape index: {}]   ;;  %s2060_s10 = inlined_call_operand.vmem [shape: f32[1,32], index: 10, kind: input, shape index: {}]   ;;  %s2061_s11 = inlined_call_operand.hbm [shape: f32[4,8,32], index: 11, kind: output, shape index: {0}]   ;;  %s2062_s12 = inlined_call_operand.hbm [shape: f32[4,8,8], index: 12, kind: output, shape index: {1}]  }
   0x1   :  { %19 = vsyncpa [#allocation6], 0 }
   0x2   :  { %20 = vsyncpa [#allocation9], 0 }
   0x3   :  { %21 = vsyncpa [#allocation12], 0 }
   0x4   :  { %22 = vsyncpa [#allocation4], 0 }
   0x5   :  { %23 = vsyncpa [#allocation16], 0  ;;  %s1724_s21 = smov [#allocation5]   ;;  %s1725_s23 = smov [#allocation8]  }
   0x6   :  { %s41_s22 = sshll.u32 %s1724_s21, 4  ;;  %s65_s24 = sshll.u32 %s1725_s23, 4  ;;  %s42_s22 = int_to_ptr.vmem [resolvable:$true] %s41_s22  ;;  %s1802_s24 = int_to_ptr.vmem [resolvable:$true] %s65_s24 }
   0x7   :  { %s1514_s27 = scalar_lea.hbm %s2051_s1, 512 }
   0x8   :  { %p1515_p0 = scmp.ne.s32.totalorder %s2051_s1, %s1514_s27  ;;  %p1518_p1 = scmp.lt.u32.totalorder %s1514_s27, %s2051_s1 }
   0xa   :  { %p1520_p2 = pnand %p1518_p1, %p1515_p0 }
   0xc   :  { %1523 = shalt.err (!%p1520_p2)
}
   0xd   :  { %s1524_s14 = scalar_lea.vmem %s42_s22, 512  ;;  %p1529_p4 = scmp.lt.s32.totalorder %s42_s22, %s42_s22 }
   0xe   :  { %p1525_p3 = scmp.ne.s32.totalorder %s42_s22, %s1524_s14  ;;  %p1530_p5 = scmp.lt.s32.totalorder %s1524_s14, %s1524_s14 }
  0x10   :  { %p1531_p6 = por %p1530_p5, %p1529_p4 }
  0x12   :  { %p1532_p7 = pnand %p1531_p6, %p1525_p3 }
  0x14   :  { %1535 = shalt.err (!%p1532_p7)
}
  0x15   :  { %s1726_s15 = smov 128   ;;  %s1727_s16 = smov 8  }
  0x16   :  { %47 = dma.hbm_to_vmem [thread:$0]  %s2051_s1, 512, %s42_s22, [#allocation6], %s1726_s15, %s1726_s15, %s1727_s16  }
  0x17   :  { %s1536_s21 = scalar_lea.hbm %s2053_s3, 512 }
  0x18   :  { %p1537_p8 = scmp.ne.s32.totalorder %s2053_s3, %s1536_s21  ;;  %p1540_p9 = scmp.lt.u32.totalorder %s1536_s21, %s2053_s3 }
  0x1a   :  { %p1542_p10 = pnand %p1540_p9, %p1537_p8 }
  0x1c   :  { %1545 = shalt.err (!%p1542_p10)
}
  0x1d   :  { %s1546_s28 = scalar_lea.vmem %s1802_s24, 512  ;;  %p1551_p12 = scmp.lt.s32.totalorder %s1802_s24, %s1802_s24 }
  0x1e   :  { %p1547_p11 = scmp.ne.s32.totalorder %s1802_s24, %s1546_s28  ;;  %p1552_p13 = scmp.lt.s32.totalorder %s1546_s28, %s1546_s28 }
  0x20   :  { %p1553_p0 = por %p1552_p13, %p1551_p12 }
  0x22   :  { %p1554_p1 = pnand %p1553_p0, %p1547_p11 }
  0x24   :  { %1557 = shalt.err (!%p1554_p1)
}
  0x25   :  { %71 = dma.hbm_to_vmem [thread:$0]  %s2053_s3, 512, %s1802_s24, [#allocation9], %s1726_s15, %s1726_s15, %s1727_s16  }
  0x26   :  { %s1728_s29 = smov [#allocation11]   ;;  %s1729_s13 = smov [#allocation2]  }
  0x27   :  { %s93_s30 = sshll.u32 %s1728_s29, 4  ;;  %s29_s14 = sshll.u32 %s1729_s13, 4  ;;  %s94_s30 = int_to_ptr.vmem [resolvable:$true] %s93_s30  ;;  %s1839_s14 = int_to_ptr.vmem [resolvable:$true] %s29_s14 }
  0x28   :  { %s1558_s19 = scalar_lea.hbm %s2057_s7, 512 }
  0x29   :  { %p1559_p2 = scmp.ne.s32.totalorder %s2057_s7, %s1558_s19  ;;  %p1562_p3 = scmp.lt.u32.totalorder %s1558_s19, %s2057_s7 }
  0x2b   :  { %p1564_p4 = pnand %p1562_p3, %p1559_p2 }
  0x2d   :  { %1567 = shalt.err (!%p1564_p4)
}
  0x2e   :  { %s1568_s3 = scalar_lea.vmem %s94_s30, 512  ;;  %p1573_p6 = scmp.lt.s32.totalorder %s94_s30, %s94_s30 }
  0x2f   :  { %p1569_p5 = scmp.ne.s32.totalorder %s94_s30, %s1568_s3  ;;  %p1574_p7 = scmp.lt.s32.totalorder %s1568_s3, %s1568_s3 }
  0x31   :  { %p1575_p8 = por %p1574_p7, %p1573_p6 }
  0x33   :  { %p1576_p9 = pnand %p1575_p8, %p1569_p5 }
  0x35   :  { %1579 = shalt.err (!%p1576_p9)
}
  0x36   :  { %99 = dma.hbm_to_vmem [thread:$0]  %s2057_s7, 512, %s94_s30, [#allocation12], %s1726_s15, %s1726_s15, %s1727_s16  }
  0x37   :  { %s1580_s1 = scalar_lea.hbm %s2050_s0, 512 }
  0x38   :  { %p1581_p10 = scmp.ne.s32.totalorder %s2050_s0, %s1580_s1  ;;  %p1584_p11 = scmp.lt.u32.totalorder %s1580_s1, %s2050_s0 }
  0x3a   :  { %p1586_p12 = pnand %p1584_p11, %p1581_p10 }
  0x3c   :  { %1589 = shalt.err (!%p1586_p12)
}
  0x3d   :  { %s1590_s18 = scalar_lea.vmem %s1839_s14, 512  ;;  %p1595_p0 = scmp.lt.s32.totalorder %s1839_s14, %s1839_s14 }
  0x3e   :  { %p1591_p13 = scmp.ne.s32.totalorder %s1839_s14, %s1590_s18  ;;  %p1596_p1 = scmp.lt.s32.totalorder %s1590_s18, %s1590_s18 }
  0x40   :  { %p1597_p2 = por %p1596_p1, %p1595_p0 }
  0x42   :  { %p1598_p3 = pnand %p1597_p2, %p1591_p13 }
  0x44   :  { %1601 = shalt.err (!%p1598_p3)
}
  0x45   :  { %35 = dma.hbm_to_vmem [thread:$0]  %s2050_s0, 512, %s1839_s14, [#allocation3], %s1726_s15, %s1726_s15, %s1727_s16  }
  0x46   :  { %s1730_s19 = smov [#allocation7]   ;;  %s1731_s21 = smov [#allocation10]  }
  0x47   :  { %s53_s20 = sshll.u32 %s1730_s19, 4  ;;  %s79_s23 = sshll.u32 %s1731_s21, 4  ;;  %s54_s20 = int_to_ptr.vmem [resolvable:$true] %s53_s20  ;;  %s1876_s23 = int_to_ptr.vmem [resolvable:$true] %s79_s23 }
  0x48   :  { %s1602_s24 = scalar_lea.hbm %s2052_s2, 512 }
  0x49   :  { %p1603_p4 = scmp.ne.s32.totalorder %s2052_s2, %s1602_s24  ;;  %p1606_p5 = scmp.lt.u32.totalorder %s1602_s24, %s2052_s2 }
  0x4b   :  { %p1608_p6 = pnand %p1606_p5, %p1603_p4 }
  0x4d   :  { %1611 = shalt.err (!%p1608_p6)
}
  0x4e   :  { %s1612_s0 = scalar_lea.vmem %s54_s20, 512  ;;  %p1617_p8 = scmp.lt.s32.totalorder %s54_s20, %s54_s20 }
  0x4f   :  { %p1613_p7 = scmp.ne.s32.totalorder %s54_s20, %s1612_s0  ;;  %p1618_p9 = scmp.lt.s32.totalorder %s1612_s0, %s1612_s0 }
  0x51   :  { %p1619_p10 = por %p1618_p9, %p1617_p8 }
  0x53   :  { %p1620_p11 = pnand %p1619_p10, %p1613_p7 }
  0x55   :  { %1623 = shalt.err (!%p1620_p11)
}
  0x56   :  { %59 = dma.hbm_to_vmem [thread:$0]  %s2052_s2, 512, %s54_s20, [#allocation6], %s1726_s15, %s1726_s15, %s1727_s16  }
  0x57   :  { %s1624_s17 = scalar_lea.hbm %s2055_s5, 512 }
  0x58   :  { %p1625_p12 = scmp.ne.s32.totalorder %s2055_s5, %s1624_s17  ;;  %p1628_p13 = scmp.lt.u32.totalorder %s1624_s17, %s2055_s5 }
  0x5a   :  { %p1630_p0 = pnand %p1628_p13, %p1625_p12 }
  0x5c   :  { %1633 = shalt.err (!%p1630_p0)
}
  0x5d   :  { %s1634_s21 = scalar_lea.vmem %s1876_s23, 512  ;;  %p1639_p2 = scmp.lt.s32.totalorder %s1876_s23, %s1876_s23 }
  0x5e   :  { %p1635_p1 = scmp.ne.s32.totalorder %s1876_s23, %s1634_s21  ;;  %p1640_p3 = scmp.lt.s32.totalorder %s1634_s21, %s1634_s21 }
  0x60   :  { %p1641_p4 = por %p1640_p3, %p1639_p2 }
  0x62   :  { %p1642_p5 = pnand %p1641_p4, %p1635_p1 }
  0x64   :  { %1645 = shalt.err (!%p1642_p5)
}
  0x65   :  { %85 = dma.hbm_to_vmem [thread:$0]  %s2055_s5, 512, %s1876_s23, [#allocation9], %s1726_s15, %s1726_s15, %s1727_s16  }
  0x66   :  { %s1732_s25 = smov [#allocation13]   ;;  %s1646_s27 = scalar_lea.hbm %s2058_s8, 16 }
  0x67   :  { %s106_s3 = sshll.u32 %s1732_s25, 4  ;;  %p1647_p6 = scmp.ne.s32.totalorder %s2058_s8, %s1646_s27  ;;  %s107_s3 = int_to_ptr.vmem [resolvable:$true] %s106_s3 }
  0x68   :  { %p1650_p7 = scmp.lt.u32.totalorder %s1646_s27, %s2058_s8 }
  0x6a   :  { %p1652_p8 = pnand %p1650_p7, %p1647_p6 }
  0x6c   :  { %1655 = shalt.err (!%p1652_p8)
}
  0x6d   :  { %s1656_s22 = scalar_lea.vmem %s107_s3, 16  ;;  %s1660_s5 = scalar_lea.vmem %s107_s3, 32 }
  0x6e   :  { %p1657_p9 = scmp.ne.s32.totalorder %s107_s3, %s1656_s22  ;;  %p1661_p10 = scmp.lt.s32.totalorder %s107_s3, %s107_s3 }
  0x6f   :  { %p1662_p11 = scmp.lt.s32.totalorder %s1660_s5, %s1656_s22 }
  0x71   :  { %p1663_p12 = por %p1662_p11, %p1661_p10 }
  0x73   :  { %p1664_p13 = pnand %p1663_p12, %p1657_p9 }
  0x75   :  { %1667 = shalt.err (!%p1664_p13)
}
  0x76   :  { %109 = dma.hbm_to_vmem [thread:$0]  %s2058_s8, 16, %s107_s3, [#allocation12]  }
  0x77   :  { %1712 = dma.done.wait [#allocation3], 512  }
  0x78   :  { %1713 = vsyncadd [#allocation3], 4294966784 }
  0x79   :  { %1714 = dma.done.wait [#allocation6], 1024  }
  0x7a   :  { %1715 = vsyncadd [#allocation6], 4294966272 }
  0x7b   :  { %1716 = dma.done.wait [#allocation9], 1024  }
  0x7c   :  { %1717 = vsyncadd [#allocation9], 4294966272 }
  0x7d   :  { %1718 = dma.done.wait [#allocation12], 528  }
  0x7e   :  { %1719 = vsyncadd [#allocation12], 4294966768  ;;  %vm150_vm0 = vcmask 261120   ;;  %v139_v0 = vld [vmem:[#allocation8] sm:$0xff]  ;;  %v140_v1 = vld [vmem:[#allocation8 + $0x8] sm:$0xff]  ;;  %v1733_v28 = vmov 0.0  }
  0x7f   :  { %v141_v2 = vld [vmem:[#allocation8 + $0x10] sm:$0xff]  ;;  %v1453_v3 = vpack.c.bf16 %v140_v1, %v139_v0  ;;  %v142_v4 = vld [vmem:[#allocation8 + $0x18] sm:$0xff]  ;;  %v135_v5 = vld [vmem:[#allocation2] sm:$0xff]  ;;  %vm1734_vm1 = vmmov 0   ;;  %vm776_vm2 = vcmask 64512  }
  0x80   :  { %v1457_v6 = vpack.c.bf16 %v142_v4, %v141_v2  ;;  %1365 = vmatprep.mubr.msk.f32.mxu1 %vm150_vm0, %v135_v5  ;;  %v252_v7 = vld [vmem:[#allocation10] sm:$0xff]  ;;  %v253_v8 = vld [vmem:[#allocation10 + $0x8] sm:$0xff]  ;;  %v254_v10 = vld [vmem:[#allocation10 + $0x10] sm:$0xff] }
  0x81   :  { %1454 = vmatprep.subr.bf16.mxu1 %v1453_v3  ;;  %v1461_v9 = vpack.c.bf16 %v253_v8, %v252_v7  ;;  %v255_v11 = vld [vmem:[#allocation10 + $0x18] sm:$0xff]  ;;  %v136_v12 = vld [vmem:[#allocation2 + $0x8] sm:$0xff]  ;;  %v137_v13 = vld [vmem:[#allocation2 + $0x10] sm:$0xff] }
  0x82   :  { %1456 = vmatpush3.bf16.msra.mxu1 %v1453_v3  ;;  %v1465_v14 = vpack.c.bf16 %v255_v11, %v254_v10  ;;  %v138_v15 = vld [vmem:[#allocation2 + $0x18] sm:$0xff]  ;;  %v248_v16 = vld [vmem:[#allocation5] sm:$0xff]  ;;  %v249_v17 = vld [vmem:[#allocation5 + $0x8] sm:$0xff] }
  0x83   :  { %1458 = vmatprep.subr.bf16.mxu1 %v1457_v6  ;;  %v250_v18 = vld [vmem:[#allocation5 + $0x10] sm:$0xff]  ;;  %v251_v19 = vld [vmem:[#allocation5 + $0x18] sm:$0xff]  ;;  %v364_v20 = vld [vmem:[#allocation11] sm:$0xff] }
  0x84   :  { %v365_v21 = vld [vmem:[#allocation11 + $0x8] sm:$0xff]  ;;  %v366_v23 = vld [vmem:[#allocation11 + $0x10] sm:$0xff]  ;;  %v367_v24 = vld [vmem:[#allocation11 + $0x18] sm:$0xff] }
  0x85   :  { %v1469_v22 = vpack.c.bf16 %v365_v21, %v364_v20  ;;  %v1473_v25 = vpack.c.bf16 %v367_v24, %v366_v23  ;;  %v360_v26 = vld [vmem:[#allocation7] sm:$0xff]  ;;  %v361_v27 = vld [vmem:[#allocation7 + $0x8] sm:$0xff]  ;;  %v362_v29 = vld [vmem:[#allocation7 + $0x10] sm:$0xff] }
  0x86   :  { %1460 = vmatpush3.bf16.msra.mxu1 %v1457_v6  ;;  %1393 = vmatprep.mubr.msk.f32.mxu0 %vm150_vm0, %v360_v26  ;;  %v363_v30 = vld [vmem:[#allocation7 + $0x18] sm:$0xff]  ;;  %v1282_v35 = vld [vmem:[%s2056_s6] ss:$0 sm:$0xff] }
  0x87   :  { %1462 = vmatprep.subr.bf16.mxu1 %v1461_v9  ;;  %1470 = vmatprep.subr.bf16.mxu0 %v1469_v22  ;;  %v1277_v38 = vld [vmem:[%s2054_s4] ss:$0 sm:$0xff] }
  0x88   :  { %1472 = vmatpush3.bf16.msra.mxu0 %v1469_v22  ;;  %v1287_v49 = vld [vmem:[#allocation13] ss:$0 sm:$0xff] }
  0x89   :  { %1366 = vmatmul.mubr.msk.f32.vlgmr.msra.gmra.mrb[0].mxu1 %vm150_vm0, %v136_v12  ;;  %1474 = vmatprep.subr.bf16.mxu0 %v1473_v25 }
  0x8a   :  { %1464 = vmatpush3.bf16.msra.mxu1 %v1461_v9  ;;  %1368 = vmatprep.mubr.msk.f32.mxu1 %vm150_vm0, %v137_v13 }
  0x8b   :  { %1466 = vmatprep.subr.bf16.mxu1 %v1465_v14 }
  0x8c   :  { %1476 = vmatpush3.bf16.msra.mxu0 %v1473_v25 }
  0x8d   :  { %1369 = vmatmul.mubr.msk.f32.gmra.mrb[2].mxu1 %vm150_vm0, %v138_v15  ;;  %1409 = vmatprep.subr.mxu0 %v1733_v28 }
  0x8e   :  { %1468 = vmatpush3.bf16.msra.mxu1 %v1465_v14  ;;  %1379 = vmatprep.mubr.msk.f32.mxu1 %vm150_vm0, %v248_v16 }
  0x8f   :  { %1394 = vmatmul.mubr.msk.f32.vlgmr.msra.gmra.mrb[0].mxu0 %vm150_vm0, %v361_v27  ;;  %1399 = vmatprep.subr.mxu1 %v1733_v28 }
  0x90   :  { %1396 = vmatprep.mubr.msk.f32.mxu0 %vm150_vm0, %v362_v29 }
  0x91   :  { %1380 = vmatmul.mubr.msk.f32.vlgmr.msra.gmra.mrb[4].mxu1 %vm150_vm0, %v249_v17 }
  0x92   :  { %1382 = vmatprep.mubr.msk.f32.mxu1 %vm150_vm0, %v250_v18 }
  0x93   :  { %1397 = vmatmul.mubr.msk.f32.gmra.mrb[2].mxu0 %vm150_vm0, %v363_v30 }
  0x94   :  { %1411 = vmatprep.mubr.msk.f32.mxu0 %vm1734_vm1, %v1733_v28 }
  0x95   :  { %1383 = vmatmul.mubr.msk.f32.gmra.mrb[6].mxu1 %vm150_vm0, %v251_v19 }
  0x96   :  { %1401 = vmatprep.mubr.msk.f32.mxu1 %vm1734_vm1, %v1733_v28 }
 0x15c   :  { %v1367_v31 = vpop.f32.mrb[0].mxu1 }
 0x15d   :  { %v229_v32 = vpop.f32.mrb[1].mxu1  ;;  %v235_v45 = vadd.f32 %v1367_v31, %v1277_v38 }
 0x15e   :  { %v230_v41 = vadd.f32 %v1277_v38, %v229_v32 }
 0x160   :  { %v1370_v33 = vpop.f32.mrb[2].mxu1 }
 0x161   :  { %v239_v34 = vpop.f32.mrb[3].mxu1  ;;  %v245_v48 = vadd.f32 %v1370_v33, %v1277_v38 }
 0x162   :  { %v240_v46 = vadd.f32 %v1277_v38, %v239_v34  ;;  %v1395_v50 = vpop.f32.mrb[0].mxu0 }
 0x163   :  { %v459_v51 = vadd.f32 %v1395_v50, %v1287_v49  ;;  %v453_v52 = vpop.f32.mrb[1].mxu0 }
 0x164   :  { %v1381_v36 = vpop.f32.mrb[4].mxu1  ;;  %v454_v53 = vadd.f32 %v1287_v49, %v453_v52 }
 0x165   :  { %v341_v37 = vpop.f32.mrb[5].mxu1  ;;  %v347_v43 = vadd.f32 %v1381_v36, %v1282_v35  ;;  %v1130_v36 = vld [vmem:[%s2059_s9 + $0x8] sm:$0xff] }
 0x166   :  { %v342_v39 = vadd.f32 %v1282_v35, %v341_v37  ;;  %v1398_v54 = vpop.f32.mrb[2].mxu0 }
 0x167   :  { %v463_v55 = vpop.f32.mrb[3].mxu0  ;;  %v1971_v56 = vadd.f32 %v1398_v54, %v1287_v49  ;;  %v1131_v54 = vld [vmem:[%s2059_s9 + $0x10] sm:$0xff] }
 0x168   :  { %v1384_v40 = vpop.f32.mrb[6].mxu1  ;;  %1400 = vmatpush3.xpose.msk.msra.mxu1 %vm150_vm0, %v342_v39  ;;  %v1973_v57 = vadd.f32 %v1287_v49, %v463_v55  ;;  %v1132_v55 = vld [vmem:[%s2059_s9 + $0x18] sm:$0xff] }
 0x169   :  { %v351_v42 = vpop.f32.mrb[7].mxu1  ;;  %1404 = vmatprep.subr.mxu1 %v1733_v28  ;;  %v357_v47 = vadd.f32 %v1384_v40, %v1282_v35 }
 0x16a   :  { %v352_v44 = vadd.f32 %v1282_v35, %v351_v42  ;;  %v1129_v35 = vld [vmem:[%s2059_s9] sm:$0xff]  ;;  %s1735_s9 = smov [#allocation15]  }
 0x16b   :  { %1402 = vmatmul.mubr.msk.f32.vlgmr.msra.gmra.mrb[8].mxu1 %vm150_vm0, %v230_v41  ;;  %s1258_s25 = sshll.u32 %s1735_s9, 4  ;;  %s1259_s25 = int_to_ptr.vmem [resolvable:$true] %s1258_s25 }
 0x16c   :  { %1405 = vmatpush3.xpose.msk.msra.mxu1 %vm150_vm0, %v347_v43  ;;  %1410 = vmatpush3.xpose.msk.msra.mxu0 %vm150_vm0, %v352_v44  ;;  %v1477_v43 = vpack.c.bf16 %v1130_v36, %v1129_v35  ;;  %s1668_s3 = scalar_lea.vmem %s1259_s25, 512  ;;  %p1673_p1 = scmp.lt.s32.totalorder %s1259_s25, %s1259_s25 }
 0x16d   :  { %1406 = vmatprep.mubr.msk.f32.mxu1 %vm1734_vm1, %v1733_v28  ;;  %1414 = vmatprep.subr.mxu1 %v1733_v28  ;;  %p1669_p0 = scmp.ne.s32.totalorder %s1259_s25, %s1668_s3  ;;  %p1674_p2 = scmp.lt.s32.totalorder %s1668_s3, %s1668_s3 }
 0x16e   :  { %1419 = vmatprep.subr.mxu0 %v1733_v28 }
 0x16f   :  { %1407 = vmatmul.mubr.msk.f32.vlgmr.msra.gmra.mrb[10].mxu1 %vm150_vm0, %v235_v45  ;;  %1412 = vmatmul.mubr.msk.f32.vlgmr.msra.gmra.mrb[4].mxu0 %vm150_vm0, %v240_v46  ;;  %p1675_p3 = por %p1674_p2, %p1673_p1 }
 0x170   :  { %1415 = vmatpush3.xpose.msk.msra.mxu1 %vm150_vm0, %v357_v47  ;;  %1416 = vmatprep.mubr.msk.f32.mxu1 %vm1734_vm1, %v1733_v28 }
 0x171   :  { %1424 = vmatprep.subr.mxu1 %v1733_v28  ;;  %1421 = vmatprep.mubr.msk.f32.mxu0 %vm1734_vm1, %v1733_v28  ;;  %p1676_p4 = pnand %p1675_p3, %p1669_p0 }
 0x172   :  { %1420 = vmatpush3.msra.mxu0 %v454_v53 }
 0x173   :  { %1417 = vmatmul.mubr.msk.f32.vlgmr.msra.gmra.mrb[12].mxu1 %vm150_vm0, %v245_v48  ;;  %1429 = vmatprep.subr.mxu0 %v1733_v28 }
 0x174   :  { %1426 = vmatprep.mubr.msk.f32.mxu1 %vm1734_vm1, %v1733_v28  ;;  %1425 = vmatpush3.msra.mxu1 %v459_v51 }
 0x175   :  { %1434 = vmatprep.subr.mxu1 %v1733_v28 }
 0x23e   :  { %v544_v58 = vpop.f32.mrb[8].mxu1 }
 0x23f   :  { %v1403_v59 = vpop.f32.mrb[9].mxu1  ;;  %v777_v60 = vsel %vm776_vm2, %v544_v58, -inf }
 0x240   :  { %778 = vmax.xlane.f32.xlu0 %v777_v60 }
 0x242   :  { %v620_v61 = vpop.f32.mrb[10].mxu1  ;;  %v696_v62 = vpop.f32.mrb[4].mxu0 }
 0x243   :  { %v1408_v63 = vpop.f32.mrb[11].mxu1  ;;  %v1413_v0 = vpop.f32.mrb[5].mxu0  ;;  %v783_v1 = vsel %vm776_vm2, %v696_v62, -inf  ;;  %v780_v2 = vsel %vm776_vm2, %v620_v61, -inf }
 0x244   :  { %784 = vmax.xlane.f32.xlu1 %v783_v1  ;;  %781 = vmax.xlane.f32.xlu0 %v780_v2 }
 0x246   :  { %v772_v3 = vpop.f32.mrb[12].mxu1 }
 0x247   :  { %v1418_v4 = vpop.f32.mrb[13].mxu1  ;;  %v786_v5 = vsel %vm776_vm2, %v772_v3, -inf }
 0x248   :  { %787 = vmax.xlane.f32.xlu1 %v786_v5 }
 0x2cd   :  { %v779_v6 = vpop.xlane.xlu0 %778 }
 0x2ce   :  { %v789_v7 = vsub.f32 %v544_v58, %v779_v6 }
 0x2d0   :  { %v793_v8 = vmul.f32 1.442695, %v789_v7 }
 0x2d1   :  { %v785_v9 = vpop.xlane.xlu1 %784  ;;  %v782_v10 = vpop.xlane.xlu0 %781 }
 0x2d2   :  { %1498 = vpow2.f32 %v793_v8  ;;  %v791_v11 = vsub.f32 %v696_v62, %v785_v9  ;;  %v790_v12 = vsub.f32 %v620_v61, %v782_v10 }
 0x2d4   :  { %v797_v13 = vmul.f32 1.442695, %v791_v11  ;;  %v795_v14 = vmul.f32 1.442695, %v790_v12 }
 0x2d5   :  { %v788_v15 = vpop.xlane.xlu1 %787 }
 0x2d6   :  { %1500 = vpow2.f32 %v797_v13  ;;  %v792_v16 = vsub.f32 %v772_v3, %v788_v15 }
 0x2d7   :  { %1502 = vpow2.f32 %v795_v14 }
 0x2d8   :  { %v799_v17 = vmul.f32 1.442695, %v792_v16 }
 0x2da   :  { %1504 = vpow2.f32 %v799_v17 }
 0x2dc   :  { %v1499_v18 = vpop.eup %1498 }
 0x2dd   :  { %v801_v19 = vsel %vm776_vm2, %v1499_v18, 0.0 }
 0x2de   :  { %802 = vadd.xlane.f32.xlu0 %v801_v19 }
 0x2e0   :  { %v1501_v20 = vpop.eup %1500 }
 0x2e1   :  { %v1503_v21 = vpop.eup %1502  ;;  %v807_v22 = vsel %vm776_vm2, %v1501_v20, 0.0 }
 0x2e2   :  { %808 = vadd.xlane.f32.xlu0 %v807_v22  ;;  %v804_v23 = vsel %vm776_vm2, %v1503_v21, 0.0 }
 0x2e3   :  { %805 = vadd.xlane.f32.xlu1 %v804_v23 }
 0x2e4   :  { %v1505_v24 = vpop.eup %1504 }
 0x2e5   :  { %v810_v25 = vsel %vm776_vm2, %v1505_v24, 0.0 }
 0x2e7   :  { %811 = vadd.xlane.f32.xlu1 %v810_v25 }
 0x36b   :  { %v803_v26 = vpop.xlane.xlu0 %802 }
 0x36c   :  { %1506 = vrcp.f32 %v803_v26 }
 0x36f   :  { %v809_v27 = vpop.xlane.xlu0 %808 }
 0x370   :  { %1508 = vrcp.f32 %v809_v27  ;;  %v806_v29 = vpop.xlane.xlu1 %805 }
 0x371   :  { %1510 = vrcp.f32 %v806_v29 }
 0x374   :  { %v812_v30 = vpop.xlane.xlu1 %811 }
 0x375   :  { %1512 = vrcp.f32 %v812_v30 }
 0x376   :  { %v1507_v31 = vpop.eup %1506 }
 0x377   :  { %v817_v32 = vmul.f32 %v1507_v31, %v803_v26 }
 0x379   :  { %v821_v33 = vsub.f32 2.0, %v817_v32 }
 0x37a   :  { %v1509_v34 = vpop.eup %1508 }
 0x37b   :  { %v1511_v37 = vpop.eup %1510  ;;  %v825_v38 = vmul.f32 %v1507_v31, %v821_v33  ;;  %v819_v39 = vmul.f32 %v1509_v34, %v809_v27 }
 0x37c   :  { %v818_v40 = vmul.f32 %v1511_v37, %v806_v29 }
 0x37d   :  { %v829_v41 = vmul.f32 %v1499_v18, %v825_v38  ;;  %v823_v42 = vsub.f32 2.0, %v819_v39 }
 0x37e   :  { %v822_v44 = vsub.f32 2.0, %v818_v40 }
 0x37f   :  { %v1513_v45 = vpop.eup %1512  ;;  %833 = vst.msk [vmem:[#allocation15] sm:$0xff] %vm776_vm2, %v829_v41  ;;  %v827_v46 = vmul.f32 %v1509_v34, %v823_v42  ;;  %1422 = vmatmul.mubr.msk.f32.vlgmr.msra.gmra.mrb[6].mxu0 %vm776_vm2, %v829_v41 }
 0x380   :  { %v826_v47 = vmul.f32 %v1511_v37, %v822_v44  ;;  %v820_v48 = vmul.f32 %v1513_v45, %v812_v30  ;;  %1430 = vmatpush3.msra.mxu0 %v1973_v57  ;;  %1431 = vmatprep.mubr.msk.f32.mxu0 %vm1734_vm1, %v1733_v28  ;;  %v1481_v57 = vpack.c.bf16 %v1132_v55, %v1131_v54 }
 0x381   :  { %v831_v49 = vmul.f32 %v1501_v20, %v827_v46  ;;  %1478 = vmatprep.subr.bf16.mxu0 %v1477_v43 }
 0x382   :  { %v830_v50 = vmul.f32 %v1503_v21, %v826_v47  ;;  %v824_v51 = vsub.f32 2.0, %v820_v48 }
 0x383   :  { %835 = vst.msk [vmem:[#allocation15 + $0x10] sm:$0xff] %vm776_vm2, %v831_v49  ;;  %1432 = vmatmul.mubr.msk.f32.vlgmr.msra.gmra.mrb[8].mxu0 %vm776_vm2, %v831_v49 }
 0x384   :  { %834 = vst.msk [vmem:[#allocation15 + $0x8] sm:$0xff] %vm776_vm2, %v830_v50  ;;  %v828_v52 = vmul.f32 %v1513_v45, %v824_v51  ;;  %1427 = vmatmul.mubr.msk.f32.vlgmr.msra.gmra.mrb[14].mxu1 %vm776_vm2, %v830_v50  ;;  %1480 = vmatpush3.bf16.msra.mxu0 %v1477_v43 }
 0x385   :  { %1435 = vmatpush3.msra.mxu1 %v1971_v56  ;;  %1436 = vmatprep.mubr.msk.f32.mxu1 %vm1734_vm1, %v1733_v28 }
 0x386   :  { %v832_v53 = vmul.f32 %v1505_v24, %v828_v52  ;;  %1482 = vmatprep.subr.bf16.mxu0 %v1481_v57 }
 0x388   :  { %836 = vst.msk [vmem:[#allocation15 + $0x18] sm:$0xff] %vm776_vm2, %v832_v53  ;;  %1437 = vmatmul.mubr.msk.f32.vlgmr.msra.gmra.mrb[16].mxu1 %vm776_vm2, %v832_v53  ;;  %1484 = vmatpush3.bf16.msra.mxu0 %v1481_v57 }
 0x452   :  { %v906_v56 = vpop.f32.mrb[6].mxu0 }
 0x453   :  { %v1423_v58 = vpop.f32.mrb[7].mxu0  ;;  %1447 = vmatprep.mubr.msk.f32.mxu0 %vm150_vm0, %v906_v56 }
 0x456   :  { %v1052_v28 = vpop.f32.mrb[8].mxu0 }
 0x457   :  { %v979_v59 = vpop.f32.mrb[14].mxu1  ;;  %v1433_v60 = vpop.f32.mrb[9].mxu0 }
 0x458   :  { %v1428_v61 = vpop.f32.mrb[15].mxu1  ;;  %1448 = vmatmul.mubr.msk.f32.vlgmr.msra.gmra.mrb[10].mxu0 %vm150_vm0, %v979_v59 }
 0x459   :  { %1450 = vmatprep.mubr.msk.f32.mxu0 %vm150_vm0, %v1052_v28 }
 0x45b   :  { %v1125_v62 = vpop.f32.mrb[16].mxu1 }
 0x45c   :  { %v1438_v63 = vpop.f32.mrb[17].mxu1  ;;  %1451 = vmatmul.mubr.msk.f32.gmra.mrb[12].mxu0 %vm150_vm0, %v1125_v62 }
 0x45d   :  { %1679 = shalt.err (!%p1676_p4)
}
 0x45e   :  { %s1680_s27 = scalar_lea.hbm %s2062_s12, 512 }
 0x45f   :  { %p1681_p5 = scmp.ne.s32.totalorder %s2062_s12, %s1680_s27  ;;  %p1684_p6 = scmp.lt.u32.totalorder %s1680_s27, %s2062_s12 }
 0x461   :  { %p1686_p7 = pnand %p1684_p6, %p1681_p5 }
 0x463   :  { %1689 = shalt.err (!%p1686_p7)
}
 0x464   :  { %1264 = dma.vmem_to_hbm [thread:$0]  %s1259_s25, 512, %s2062_s12, [#allocation16], %s1726_s15, %s1726_s15, %s1727_s16  }
 0x465   :  { %v1304_v0 = vld [vmem:[%s2060_s10] ss:$0 sm:$0xff]  ;;  %s1736_s8 = smov [#allocation14]  }
 0x466   :  { %s1246_s13 = sshll.u32 %s1736_s8, 4  ;;  %s1247_s13 = int_to_ptr.vmem [resolvable:$true] %s1246_s13 }
 0x467   :  { %s1690_s10 = scalar_lea.vmem %s1247_s13, 512  ;;  %p1695_p9 = scmp.lt.s32.totalorder %s1247_s13, %s1247_s13 }
 0x468   :  { %p1691_p8 = scmp.ne.s32.totalorder %s1247_s13, %s1690_s10  ;;  %p1696_p10 = scmp.lt.s32.totalorder %s1690_s10, %s1690_s10 }
 0x46a   :  { %p1697_p11 = por %p1696_p10, %p1695_p9 }
 0x46c   :  { %p1698_p12 = pnand %p1697_p11, %p1691_p8 }
 0x52b   :  { %v1449_v1 = vpop.f32.mrb[10].mxu0 }
 0x52c   :  { %v1224_v2 = vadd.f32 %v1449_v1, %v1304_v0  ;;  %v1218_v3 = vpop.f32.mrb[11].mxu0 }
 0x52d   :  { %v1219_v4 = vadd.f32 %v1304_v0, %v1218_v3 }
 0x52e   :  { %1238 = vst.msk [vmem:[#allocation14 + $0x8] sm:$0xff] %vm150_vm0, %v1224_v2 }
 0x52f   :  { %1237 = vst.msk [vmem:[#allocation14] sm:$0xff] %vm150_vm0, %v1219_v4  ;;  %v1452_v5 = vpop.f32.mrb[12].mxu0 }
 0x530   :  { %v1234_v6 = vadd.f32 %v1452_v5, %v1304_v0  ;;  %v1228_v7 = vpop.f32.mrb[13].mxu0 }
 0x531   :  { %v1229_v8 = vadd.f32 %v1304_v0, %v1228_v7 }
 0x532   :  { %1240 = vst.msk [vmem:[#allocation14 + $0x18] sm:$0xff] %vm150_vm0, %v1234_v6 }
 0x533   :  { %1239 = vst.msk [vmem:[#allocation14 + $0x10] sm:$0xff] %vm150_vm0, %v1229_v8 }
 0x534   :  { %1701 = shalt.err (!%p1698_p12)
}
 0x535   :  { %s1702_s18 = scalar_lea.hbm %s2061_s11, 512 }
 0x536   :  { %p1703_p13 = scmp.ne.s32.totalorder %s2061_s11, %s1702_s18  ;;  %p1706_p0 = scmp.lt.u32.totalorder %s1702_s18, %s2061_s11 }
 0x538   :  { %p1708_p1 = pnand %p1706_p0, %p1703_p13 }
 0x53a   :  { %1711 = shalt.err (!%p1708_p1)
}
 0x53b   :  { %1252 = dma.vmem_to_hbm [thread:$0]  %s1247_s13, 512, %s2061_s11, [#allocation4], %s1726_s15, %s1726_s15, %s1727_s16  }
 0x53c   :  { %1720 = dma.done.wait [#allocation4], 512  }
 0x53d   :  { %1721 = vsyncadd [#allocation4], 4294966784 }
 0x53e   :  { %1722 = dma.done.wait [#allocation16], 512  }
 0x53f   :  { %1723 = vsyncadd [#allocation16], 4294966784 }
 0x540   :  { %1271 = vsyncpa [#allocation3], 1 }
 0x541   :  { %1272 = vsyncpa [#allocation6], 1 }
 0x542   :  { %1273 = vsyncpa [#allocation9], 1 }
 0x543   :  { %1274 = vsyncpa [#allocation12], 1 }
 0x544   :  { %1275 = vsyncpa [#allocation4], 1 }
 0x545   :  { %1276 = vsyncpa [#allocation16], 1 }

</bundles_post_ra>
